<compile_context>
chip_gen: v7x
topology: tpu7x:2x2x1
jax: 0.10.0
libtpu: 0.0.40
codegen_flags: <defaults>
</compile_context>

<pallas_src>
import jax
import jax.numpy as jnp
from jax.experimental import pallas as pl
from jax.experimental.pallas import tpu as pltpu


# ---------------------------------------------------------------------------
# Kernel body.
# ---------------------------------------------------------------------------
def _lpu_body(x_ref, w_ref, b_ref, o_ref, acc_ref):
    """One (channel-tile, batch) step of LPU in NHWC layout.

    x_ref  : (H, W, Ct)  input tile, channels on lanes
    w_ref  : (9, Ct)     depthwise 3x3 weights, row k = di*3 + dj
    b_ref  : (1, Ct)     per-channel bias
    o_ref  : (H, W, Ct)  output tile (same dtype as input)
    acc_ref: (H, W, Ct)  f32 accumulator; may alias o_ref when output is f32
    """
    H, W, C = o_ref.shape

    wk = w_ref[...].astype(jnp.float32)                       # (9, Ct)
    bias = b_ref[...].astype(jnp.float32).reshape(1, 1, C)    # (1, 1, Ct)

    def wtap(k):
        return wk[k:k + 1, :].reshape(1, 1, C)                # lane-wise weight

    # Center tap fused with the residual: x * (1 + w[1,1]) + bias.
    xv = x_ref[...].astype(jnp.float32)
    acc_ref[...] = xv * (wtap(4) + 1.0) + bias

    # 8 off-center taps.  Zero padding is implicit: each tap only contributes
    # to the output rows/cols whose shifted source lies inside the image, so
    # we add it into exactly that sub-rectangle of the accumulator.  Shifts
    # are along H (outer) and W (sublane) only -> no lane movement.
    for di in range(3):
        for dj in range(3):
            if di == 1 and dj == 1:
                continue
            oh, ow = di - 1, dj - 1
            hs, he = max(0, -oh), H - max(0, oh)
            ws, we = max(0, -ow), W - max(0, ow)
            tap = x_ref[hs + oh:he + oh, ws + ow:we + ow, :].astype(jnp.float32)
            acc_ref[hs:he, ws:we, :] = (
                acc_ref[hs:he, ws:we, :] + tap * wtap(di * 3 + dj))

    if acc_ref is not o_ref:
        o_ref[...] = acc_ref[...].astype(o_ref.dtype)


def _lpu_kernel_scratch(x_ref, w_ref, b_ref, o_ref, acc_ref):
    _lpu_body(x_ref, w_ref, b_ref, o_ref, acc_ref)


def _lpu_kernel_noscratch(x_ref, w_ref, b_ref, o_ref):
    # f32 output: accumulate directly in the output block (one fewer VMEM pass).
    _lpu_body(x_ref, w_ref, b_ref, o_ref, o_ref)


# ---------------------------------------------------------------------------
# Tiling heuristics.
# ---------------------------------------------------------------------------
def _pick_c_tile(C, H, W, batch):
    """Channel-tile size for the lane axis.

    If C is a multiple of 128: pick a multiple-of-128 divisor of C such that
    the f32 block (H * W * ct * 4 bytes) stays under ~4 MiB, preferring a tile
    that yields >= 4 grid steps (v7x megacore).  Otherwise fall back to the
    full C (allowed by the block-shape rules; not lane-dense for small C but
    avoids padding traffic).
    """
    if C % 128 != 0:
        return C
    budget = 4 << 20  # f32 bytes per block
    cands = [t for t in range(128, C + 1, 128)
             if C % t == 0 and H * W * t * 4 <= budget]
    if not cands:
        # TODO(synk): tile H with a 1-row halo for very large H*W at ct=128.
        return 128
    good = [t for t in cands if batch * (C // t) >= 4]
    return max(good) if good else max(cands)


# ---------------------------------------------------------------------------
# Pallas call (NHWC core) and NCHW wrapper matching the PyTorch module.
# ---------------------------------------------------------------------------
def lpu_forward_nhwc(x, w, b):
    """x: (B, H, W, C) activations; w: (C,1,3,3) PyTorch DW weight; b: (C,)."""
    B, H, W, C = x.shape

    wk = jnp.transpose(w.reshape(C, 9), (1, 0))   # (9, C), row k = di*3 + dj
    bb = b.reshape(1, C)                          # (1, C)

    ct = _pick_c_tile(C, H, W, B)
    n_ct = C // ct
    grid = (n_ct, B)   # channel tiles outermost -> weights re-DMA'd only n_ct times

    use_scratch = (x.dtype != jnp.float32)
    kernel = _lpu_kernel_scratch if use_scratch else _lpu_kernel_noscratch
    scratch = [pltpu.VMEM((H, W, ct), jnp.float32)] if use_scratch else []

    flops = B * C * H * W * (2 * 9 + 2)           # 9 MACs + bias + residual / elem
    bytes_accessed = (x.size * x.dtype.itemsize * 2
                      + wk.size * wk.dtype.itemsize
                      + bb.size * bb.dtype.itemsize)

    return pl.pallas_call(
        kernel,
        out_shape=jax.ShapeDtypeStruct((B, H, W, C), x.dtype),
        grid_spec=pltpu.PrefetchScalarGridSpec(
            num_scalar_prefetch=0,
            grid=grid,
            in_specs=[
                pl.BlockSpec((pl.Squeezed(), H, W, ct),
                             lambda c, bi: (bi, 0, 0, c)),
                pl.BlockSpec((9, ct), lambda c, bi: (0, c)),
                pl.BlockSpec((1, ct), lambda c, bi: (0, c)),
            ],
            out_specs=pl.BlockSpec((pl.Squeezed(), H, W, ct),
                                   lambda c, bi: (bi, 0, 0, c)),
            scratch_shapes=scratch,
        ),
        compiler_params=pltpu.CompilerParams(
            dimension_semantics=("parallel", "parallel"),
            vmem_limit_bytes=48 * 1024 * 1024,     # <= ~48 MiB keeps v7x (64 MiB) safe
        ),
        cost_estimate=pl.CostEstimate(
            flops=flops, transcendentals=0, bytes_accessed=bytes_accessed),
    )(x, wk, bb)


@jax.jit
def lpu_forward(x, w, b):
    """LPU(x) = depthwise_conv3x3(x, w, b) + x for NCHW input (PyTorch layout).

    The NCHW<->NHWC transposes are layout plumbing to get channels onto the
    128-wide lane axis; a network that keeps activations in NHWC would call
    lpu_forward_nhwc directly and skip them.
    """
    B, C, H, W = x.shape
    assert w.shape == (C, 1, 3, 3), "expected PyTorch depthwise weight (C,1,3,3)"
    assert b.shape == (C,), "expected bias of shape (C,)"
    x_nhwc = jnp.transpose(x, (0, 2, 3, 1))
    y_nhwc = lpu_forward_nhwc(x_nhwc, w, b)
    return jnp.transpose(y_nhwc, (0, 3, 1, 2))


# ---------------------------------------------------------------------------
# Pure-JAX reference mirroring the PyTorch forward (f32).
# ---------------------------------------------------------------------------
def lpu_reference(x, w, b):
    xf = x.astype(jnp.float32)
    y = jax.lax.conv_general_dilated(
        xf, w.astype(jnp.float32),
        window_strides=(1, 1), padding=((1, 1), (1, 1)),
        dimension_numbers=("NCHW", "OIHW", "NCHW"),
        feature_group_count=x.shape[1])
    return y + b.astype(jnp.float32).reshape(1, -1, 1, 1) + xf


# ---------------------------------------------------------------------------
# Demo / correctness check.
# ---------------------------------------------------------------------------
if __name__ == "__main__":
    def run_case(B, C, H, W, dtype, atol, rtol):
        key = jax.random.PRNGKey(0)
        kx, kw, kb = jax.random.split(key, 3)
        x = jax.random.normal(kx, (B, C, H, W), dtype=jnp.float32)
        w = jax.random.normal(kw, (C, 1, 3, 3), dtype=jnp.float32) * 0.2
        b = jax.random.normal(kb, (C,), dtype=jnp.float32) * 0.1
        x = x.astype(dtype)

        out = jax.block_until_ready(lpu_forward(x, w, b))
        ref = lpu_reference(x.astype(jnp.float32), w, b)

        assert out.shape == (B, C, H, W)
        assert out.dtype == dtype
        assert jnp.allclose(out.astype(jnp.float32), ref, atol=atol, rtol=rtol), (
            f"mismatch vs reference for case {(B, C, H, W, dtype)}")

    # Lane-dense path (C multiple of 128), f32 activations.
    run_case(2, 128, 16, 16, jnp.float32, atol=1e-4, rtol=1e-4)
    # Same shapes, bf16 activation I/O (halves HBM traffic; f32 compute inside).
    run_case(2, 128, 16, 16, jnp.bfloat16, atol=1e-1, rtol=5e-2)
    # CMT-like stage with C not a multiple of 128 (full-C fallback path).
    run_case(2, 48, 14, 14, jnp.float32, atol=1e-4, rtol=1e-4)

    print("KERNEL_OK")
</pallas_src>

<mosaic_0001>
module attributes {stable_mosaic.version = 11 : i64} {
  func.func @_lpu_kernel_noscratch(%arg0: i32, %arg1: i32, %arg2: memref<1x16x16x128xf32, #tpu.memory_space<vmem>>, %arg3: memref<9x128xf32, #tpu.memory_space<vmem>>, %arg4: memref<1x128xf32, #tpu.memory_space<vmem>>, %arg5: memref<1x16x16x128xf32, #tpu.memory_space<vmem>>) attributes {dimension_semantics = [#tpu.dimension_semantics<parallel>, #tpu.dimension_semantics<parallel>], iteration_bounds = array<i64: 1, 2>, scalar_prefetch = 0 : i64, scratch_operands = 0 : i64, tpu.core_type = #tpu.core_type<tc>, window_params = [{transform_indices = @transform_0, window_bounds = array<i64: 1, 16, 16, 128>}, {transform_indices = @transform_1, window_bounds = array<i64: 9, 128>}, {transform_indices = @transform_2, window_bounds = array<i64: 1, 128>}, {transform_indices = @transform_3, window_bounds = array<i64: 1, 16, 16, 128>}]} {
    %c0 = arith.constant 0 : index
    %c0_0 = arith.constant 0 : index
    %0 = vector.load %arg3[%c0, %c0_0] : memref<9x128xf32, #tpu.memory_space<vmem>>, vector<9x128xf32>
    %c0_1 = arith.constant 0 : index
    %c0_2 = arith.constant 0 : index
    %1 = vector.load %arg4[%c0_1, %c0_2] : memref<1x128xf32, #tpu.memory_space<vmem>>, vector<1x128xf32>
    %2 = vector.shape_cast %1 : vector<1x128xf32> to vector<1x1x128xf32>
    %c0_3 = arith.constant 0 : index
    %c0_4 = arith.constant 0 : index
    %c0_5 = arith.constant 0 : index
    %c0_6 = arith.constant 0 : index
    %3 = vector.load %arg2[%c0_3, %c0_4, %c0_5, %c0_6] : memref<1x16x16x128xf32, #tpu.memory_space<vmem>>, vector<1x16x16x128xf32>
    %4 = vector.shape_cast %3 : vector<1x16x16x128xf32> to vector<16x16x128xf32>
    %5 = vector.extract_strided_slice %0 {offsets = [4, 0], sizes = [1, 128], strides = [1, 1]} : vector<9x128xf32> to vector<1x128xf32>
    %6 = vector.shape_cast %5 : vector<1x128xf32> to vector<1x1x128xf32>
    %cst = arith.constant 1.000000e+00 : f32
    %7 = vector.broadcast %cst : f32 to vector<1x1x128xf32>
    %8 = arith.addf %6, %7 : vector<1x1x128xf32>
    %9 = vector.broadcast %8 : vector<1x1x128xf32> to vector<16x16x128xf32>
    %10 = arith.mulf %4, %9 : vector<16x16x128xf32>
    %11 = vector.broadcast %2 : vector<1x1x128xf32> to vector<16x16x128xf32>
    %12 = arith.addf %10, %11 : vector<16x16x128xf32>
    %c0_7 = arith.constant 0 : index
    %c0_8 = arith.constant 0 : index
    %c0_9 = arith.constant 0 : index
    %c0_10 = arith.constant 0 : index
    %13 = vector.load %arg5[%c0_7, %c0_8, %c0_9, %c0_10] : memref<1x16x16x128xf32, #tpu.memory_space<vmem>>, vector<1x16x16x128xf32>
    %14 = vector.shape_cast %13 : vector<1x16x16x128xf32> to vector<16x16x128xf32>
    %15 = vector.shape_cast %12 : vector<16x16x128xf32> to vector<1x16x16x128xf32>
    tpu.vector_store %arg5[%c0_7, %c0_8, %c0_9, %c0_10], %15 {strides = array<i32>} : memref<1x16x16x128xf32, #tpu.memory_space<vmem>>, vector<1x16x16x128xf32>,
    %c0_11 = arith.constant 0 : index
    %c0_12 = arith.constant 0 : index
    %c0_13 = arith.constant 0 : index
    %c0_14 = arith.constant 0 : index
    %16 = vector.load %arg2[%c0_11, %c0_12, %c0_13, %c0_14] : memref<1x16x16x128xf32, #tpu.memory_space<vmem>>, vector<1x15x15x128xf32>
    %17 = vector.shape_cast %16 : vector<1x15x15x128xf32> to vector<15x15x128xf32>
    %c0_15 = arith.constant 0 : index
    %c1 = arith.constant 1 : index
    %c1_16 = arith.constant 1 : index
    %c0_17 = arith.constant 0 : index
    %18 = vector.load %arg5[%c0_15, %c1, %c1_16, %c0_17] : memref<1x16x16x128xf32, #tpu.memory_space<vmem>>, vector<1x15x15x128xf32>
    %19 = vector.shape_cast %18 : vector<1x15x15x128xf32> to vector<15x15x128xf32>
    %20 = vector.extract_strided_slice %0 {offsets = [0, 0], sizes = [1, 128], strides = [1, 1]} : vector<9x128xf32> to vector<1x128xf32>
    %21 = vector.shape_cast %20 : vector<1x128xf32> to vector<1x1x128xf32>
    %22 = vector.broadcast %21 : vector<1x1x128xf32> to vector<15x15x128xf32>
    %23 = arith.mulf %17, %22 : vector<15x15x128xf32>
    %24 = arith.addf %19, %23 : vector<15x15x128xf32>
    %c0_18 = arith.constant 0 : index
    %c1_19 = arith.constant 1 : index
    %c1_20 = arith.constant 1 : index
    %c0_21 = arith.constant 0 : index
    %25 = vector.load %arg5[%c0_18, %c1_19, %c1_20, %c0_21] : memref<1x16x16x128xf32, #tpu.memory_space<vmem>>, vector<1x15x15x128xf32>
    %26 = vector.shape_cast %25 : vector<1x15x15x128xf32> to vector<15x15x128xf32>
    %27 = vector.shape_cast %24 : vector<15x15x128xf32> to vector<1x15x15x128xf32>
    tpu.vector_store %arg5[%c0_18, %c1_19, %c1_20, %c0_21], %27 {strides = array<i32>} : memref<1x16x16x128xf32, #tpu.memory_space<vmem>>, vector<1x15x15x128xf32>,
    %c0_22 = arith.constant 0 : index
    %c0_23 = arith.constant 0 : index
    %c0_24 = arith.constant 0 : index
    %c0_25 = arith.constant 0 : index
    %28 = vector.load %arg2[%c0_22, %c0_23, %c0_24, %c0_25] : memref<1x16x16x128xf32, #tpu.memory_space<vmem>>, vector<1x15x16x128xf32>
    %29 = vector.shape_cast %28 : vector<1x15x16x128xf32> to vector<15x16x128xf32>
    %c0_26 = arith.constant 0 : index
    %c1_27 = arith.constant 1 : index
    %c0_28 = arith.constant 0 : index
    %c0_29 = arith.constant 0 : index
    %30 = vector.load %arg5[%c0_26, %c1_27, %c0_28, %c0_29] : memref<1x16x16x128xf32, #tpu.memory_space<vmem>>, vector<1x15x16x128xf32>
    %31 = vector.shape_cast %30 : vector<1x15x16x128xf32> to vector<15x16x128xf32>
    %32 = vector.extract_strided_slice %0 {offsets = [1, 0], sizes = [1, 128], strides = [1, 1]} : vector<9x128xf32> to vector<1x128xf32>
    %33 = vector.shape_cast %32 : vector<1x128xf32> to vector<1x1x128xf32>
    %34 = vector.broadcast %33 : vector<1x1x128xf32> to vector<15x16x128xf32>
    %35 = arith.mulf %29, %34 : vector<15x16x128xf32>
    %36 = arith.addf %31, %35 : vector<15x16x128xf32>
    %c0_30 = arith.constant 0 : index
    %c1_31 = arith.constant 1 : index
    %c0_32 = arith.constant 0 : index
    %c0_33 = arith.constant 0 : index
    %37 = vector.load %arg5[%c0_30, %c1_31, %c0_32, %c0_33] : memref<1x16x16x128xf32, #tpu.memory_space<vmem>>, vector<1x15x16x128xf32>
    %38 = vector.shape_cast %37 : vector<1x15x16x128xf32> to vector<15x16x128xf32>
    %39 = vector.shape_cast %36 : vector<15x16x128xf32> to vector<1x15x16x128xf32>
    tpu.vector_store %arg5[%c0_30, %c1_31, %c0_32, %c0_33], %39 {strides = array<i32>} : memref<1x16x16x128xf32, #tpu.memory_space<vmem>>, vector<1x15x16x128xf32>,
    %c0_34 = arith.constant 0 : index
    %c0_35 = arith.constant 0 : index
    %c1_36 = arith.constant 1 : index
    %c0_37 = arith.constant 0 : index
    %40 = vector.load %arg2[%c0_34, %c0_35, %c1_36, %c0_37] : memref<1x16x16x128xf32, #tpu.memory_space<vmem>>, vector<1x15x15x128xf32>
    %41 = vector.shape_cast %40 : vector<1x15x15x128xf32> to vector<15x15x128xf32>
    %c0_38 = arith.constant 0 : index
    %c1_39 = arith.constant 1 : index
    %c0_40 = arith.constant 0 : index
    %c0_41 = arith.constant 0 : index
    %42 = vector.load %arg5[%c0_38, %c1_39, %c0_40, %c0_41] : memref<1x16x16x128xf32, #tpu.memory_space<vmem>>, vector<1x15x15x128xf32>
    %43 = vector.shape_cast %42 : vector<1x15x15x128xf32> to vector<15x15x128xf32>
    %44 = vector.extract_strided_slice %0 {offsets = [2, 0], sizes = [1, 128], strides = [1, 1]} : vector<9x128xf32> to vector<1x128xf32>
    %45 = vector.shape_cast %44 : vector<1x128xf32> to vector<1x1x128xf32>
    %46 = vector.broadcast %45 : vector<1x1x128xf32> to vector<15x15x128xf32>
    %47 = arith.mulf %41, %46 : vector<15x15x128xf32>
    %48 = arith.addf %43, %47 : vector<15x15x128xf32>
    %c0_42 = arith.constant 0 : index
    %c1_43 = arith.constant 1 : index
    %c0_44 = arith.constant 0 : index
    %c0_45 = arith.constant 0 : index
    %49 = vector.load %arg5[%c0_42, %c1_43, %c0_44, %c0_45] : memref<1x16x16x128xf32, #tpu.memory_space<vmem>>, vector<1x15x15x128xf32>
    %50 = vector.shape_cast %49 : vector<1x15x15x128xf32> to vector<15x15x128xf32>
    %51 = vector.shape_cast %48 : vector<15x15x128xf32> to vector<1x15x15x128xf32>
    tpu.vector_store %arg5[%c0_42, %c1_43, %c0_44, %c0_45], %51 {strides = array<i32>} : memref<1x16x16x128xf32, #tpu.memory_space<vmem>>, vector<1x15x15x128xf32>,
    %c0_46 = arith.constant 0 : index
    %c0_47 = arith.constant 0 : index
    %c0_48 = arith.constant 0 : index
    %c0_49 = arith.constant 0 : index
    %52 = vector.load %arg2[%c0_46, %c0_47, %c0_48, %c0_49] : memref<1x16x16x128xf32, #tpu.memory_space<vmem>>, vector<1x16x15x128xf32>
    %53 = vector.shape_cast %52 : vector<1x16x15x128xf32> to vector<16x15x128xf32>
    %c0_50 = arith.constant 0 : index
    %c0_51 = arith.constant 0 : index
    %c1_52 = arith.constant 1 : index
    %c0_53 = arith.constant 0 : index
    %54 = vector.load %arg5[%c0_50, %c0_51, %c1_52, %c0_53] : memref<1x16x16x128xf32, #tpu.memory_space<vmem>>, vector<1x16x15x128xf32>
    %55 = vector.shape_cast %54 : vector<1x16x15x128xf32> to vector<16x15x128xf32>
    %56 = vector.extract_strided_slice %0 {offsets = [3, 0], sizes = [1, 128], strides = [1, 1]} : vector<9x128xf32> to vector<1x128xf32>
    %57 = vector.shape_cast %56 : vector<1x128xf32> to vector<1x1x128xf32>
    %58 = vector.broadcast %57 : vector<1x1x128xf32> to vector<16x15x128xf32>
    %59 = arith.mulf %53, %58 : vector<16x15x128xf32>
    %60 = arith.addf %55, %59 : vector<16x15x128xf32>
    %c0_54 = arith.constant 0 : index
    %c0_55 = arith.constant 0 : index
    %c1_56 = arith.constant 1 : index
    %c0_57 = arith.constant 0 : index
    %61 = vector.load %arg5[%c0_54, %c0_55, %c1_56, %c0_57] : memref<1x16x16x128xf32, #tpu.memory_space<vmem>>, vector<1x16x15x128xf32>
    %62 = vector.shape_cast %61 : vector<1x16x15x128xf32> to vector<16x15x128xf32>
    %63 = vector.shape_cast %60 : vector<16x15x128xf32> to vector<1x16x15x128xf32>
    tpu.vector_store %arg5[%c0_54, %c0_55, %c1_56, %c0_57], %63 {strides = array<i32>} : memref<1x16x16x128xf32, #tpu.memory_space<vmem>>, vector<1x16x15x128xf32>,
    %c0_58 = arith.constant 0 : index
    %c0_59 = arith.constant 0 : index
    %c1_60 = arith.constant 1 : index
    %c0_61 = arith.constant 0 : index
    %64 = vector.load %arg2[%c0_58, %c0_59, %c1_60, %c0_61] : memref<1x16x16x128xf32, #tpu.memory_space<vmem>>, vector<1x16x15x128xf32>
    %65 = vector.shape_cast %64 : vector<1x16x15x128xf32> to vector<16x15x128xf32>
    %c0_62 = arith.constant 0 : index
    %c0_63 = arith.constant 0 : index
    %c0_64 = arith.constant 0 : index
    %c0_65 = arith.constant 0 : index
    %66 = vector.load %arg5[%c0_62, %c0_63, %c0_64, %c0_65] : memref<1x16x16x128xf32, #tpu.memory_space<vmem>>, vector<1x16x15x128xf32>
    %67 = vector.shape_cast %66 : vector<1x16x15x128xf32> to vector<16x15x128xf32>
    %68 = vector.extract_strided_slice %0 {offsets = [5, 0], sizes = [1, 128], strides = [1, 1]} : vector<9x128xf32> to vector<1x128xf32>
    %69 = vector.shape_cast %68 : vector<1x128xf32> to vector<1x1x128xf32>
    %70 = vector.broadcast %69 : vector<1x1x128xf32> to vector<16x15x128xf32>
    %71 = arith.mulf %65, %70 : vector<16x15x128xf32>
    %72 = arith.addf %67, %71 : vector<16x15x128xf32>
    %c0_66 = arith.constant 0 : index
    %c0_67 = arith.constant 0 : index
    %c0_68 = arith.constant 0 : index
    %c0_69 = arith.constant 0 : index
    %73 = vector.load %arg5[%c0_66, %c0_67, %c0_68, %c0_69] : memref<1x16x16x128xf32, #tpu.memory_space<vmem>>, vector<1x16x15x128xf32>
    %74 = vector.shape_cast %73 : vector<1x16x15x128xf32> to vector<16x15x128xf32>
    %75 = vector.shape_cast %72 : vector<16x15x128xf32> to vector<1x16x15x128xf32>
    tpu.vector_store %arg5[%c0_66, %c0_67, %c0_68, %c0_69], %75 {strides = array<i32>} : memref<1x16x16x128xf32, #tpu.memory_space<vmem>>, vector<1x16x15x128xf32>,
    %c0_70 = arith.constant 0 : index
    %c1_71 = arith.constant 1 : index
    %c0_72 = arith.constant 0 : index
    %c0_73 = arith.constant 0 : index
    %76 = vector.load %arg2[%c0_70, %c1_71, %c0_72, %c0_73] : memref<1x16x16x128xf32, #tpu.memory_space<vmem>>, vector<1x15x15x128xf32>
    %77 = vector.shape_cast %76 : vector<1x15x15x128xf32> to vector<15x15x128xf32>
    %c0_74 = arith.constant 0 : index
    %c0_75 = arith.constant 0 : index
    %c1_76 = arith.constant 1 : index
    %c0_77 = arith.constant 0 : index
    %78 = vector.load %arg5[%c0_74, %c0_75, %c1_76, %c0_77] : memref<1x16x16x128xf32, #tpu.memory_space<vmem>>, vector<1x15x15x128xf32>
    %79 = vector.shape_cast %78 : vector<1x15x15x128xf32> to vector<15x15x128xf32>
    %80 = vector.extract_strided_slice %0 {offsets = [6, 0], sizes = [1, 128], strides = [1, 1]} : vector<9x128xf32> to vector<1x128xf32>
    %81 = vector.shape_cast %80 : vector<1x128xf32> to vector<1x1x128xf32>
    %82 = vector.broadcast %81 : vector<1x1x128xf32> to vector<15x15x128xf32>
    %83 = arith.mulf %77, %82 : vector<15x15x128xf32>
    %84 = arith.addf %79, %83 : vector<15x15x128xf32>
    %c0_78 = arith.constant 0 : index
    %c0_79 = arith.constant 0 : index
    %c1_80 = arith.constant 1 : index
    %c0_81 = arith.constant 0 : index
    %85 = vector.load %arg5[%c0_78, %c0_79, %c1_80, %c0_81] : memref<1x16x16x128xf32, #tpu.memory_space<vmem>>, vector<1x15x15x128xf32>
    %86 = vector.shape_cast %85 : vector<1x15x15x128xf32> to vector<15x15x128xf32>
    %87 = vector.shape_cast %84 : vector<15x15x128xf32> to vector<1x15x15x128xf32>
    tpu.vector_store %arg5[%c0_78, %c0_79, %c1_80, %c0_81], %87 {strides = array<i32>} : memref<1x16x16x128xf32, #tpu.memory_space<vmem>>, vector<1x15x15x128xf32>,
    %c0_82 = arith.constant 0 : index
    %c1_83 = arith.constant 1 : index
    %c0_84 = arith.constant 0 : index
    %c0_85 = arith.constant 0 : index
    %88 = vector.load %arg2[%c0_82, %c1_83, %c0_84, %c0_85] : memref<1x16x16x128xf32, #tpu.memory_space<vmem>>, vector<1x15x16x128xf32>
    %89 = vector.shape_cast %88 : vector<1x15x16x128xf32> to vector<15x16x128xf32>
    %c0_86 = arith.constant 0 : index
    %c0_87 = arith.constant 0 : index
    %c0_88 = arith.constant 0 : index
    %c0_89 = arith.constant 0 : index
    %90 = vector.load %arg5[%c0_86, %c0_87, %c0_88, %c0_89] : memref<1x16x16x128xf32, #tpu.memory_space<vmem>>, vector<1x15x16x128xf32>
    %91 = vector.shape_cast %90 : vector<1x15x16x128xf32> to vector<15x16x128xf32>
    %92 = vector.extract_strided_slice %0 {offsets = [7, 0], sizes = [1, 128], strides = [1, 1]} : vector<9x128xf32> to vector<1x128xf32>
    %93 = vector.shape_cast %92 : vector<1x128xf32> to vector<1x1x128xf32>
    %94 = vector.broadcast %93 : vector<1x1x128xf32> to vector<15x16x128xf32>
    %95 = arith.mulf %89, %94 : vector<15x16x128xf32>
    %96 = arith.addf %91, %95 : vector<15x16x128xf32>
    %c0_90 = arith.constant 0 : index
    %c0_91 = arith.constant 0 : index
    %c0_92 = arith.constant 0 : index
    %c0_93 = arith.constant 0 : index
    %97 = vector.load %arg5[%c0_90, %c0_91, %c0_92, %c0_93] : memref<1x16x16x128xf32, #tpu.memory_space<vmem>>, vector<1x15x16x128xf32>
    %98 = vector.shape_cast %97 : vector<1x15x16x128xf32> to vector<15x16x128xf32>
    %99 = vector.shape_cast %96 : vector<15x16x128xf32> to vector<1x15x16x128xf32>
    tpu.vector_store %arg5[%c0_90, %c0_91, %c0_92, %c0_93], %99 {strides = array<i32>} : memref<1x16x16x128xf32, #tpu.memory_space<vmem>>, vector<1x15x16x128xf32>,
    %c0_94 = arith.constant 0 : index
    %c1_95 = arith.constant 1 : index
    %c1_96 = arith.constant 1 : index
    %c0_97 = arith.constant 0 : index
    %100 = vector.load %arg2[%c0_94, %c1_95, %c1_96, %c0_97] : memref<1x16x16x128xf32, #tpu.memory_space<vmem>>, vector<1x15x15x128xf32>
    %101 = vector.shape_cast %100 : vector<1x15x15x128xf32> to vector<15x15x128xf32>
    %c0_98 = arith.constant 0 : index
    %c0_99 = arith.constant 0 : index
    %c0_100 = arith.constant 0 : index
    %c0_101 = arith.constant 0 : index
    %102 = vector.load %arg5[%c0_98, %c0_99, %c0_100, %c0_101] : memref<1x16x16x128xf32, #tpu.memory_space<vmem>>, vector<1x15x15x128xf32>
    %103 = vector.shape_cast %102 : vector<1x15x15x128xf32> to vector<15x15x128xf32>
    %104 = vector.extract_strided_slice %0 {offsets = [8, 0], sizes = [1, 128], strides = [1, 1]} : vector<9x128xf32> to vector<1x128xf32>
    %105 = vector.shape_cast %104 : vector<1x128xf32> to vector<1x1x128xf32>
    %106 = vector.broadcast %105 : vector<1x1x128xf32> to vector<15x15x128xf32>
    %107 = arith.mulf %101, %106 : vector<15x15x128xf32>
    %108 = arith.addf %103, %107 : vector<15x15x128xf32>
    %c0_102 = arith.constant 0 : index
    %c0_103 = arith.constant 0 : index
    %c0_104 = arith.constant 0 : index
    %c0_105 = arith.constant 0 : index
    %109 = vector.load %arg5[%c0_102, %c0_103, %c0_104, %c0_105] : memref<1x16x16x128xf32, #tpu.memory_space<vmem>>, vector<1x15x15x128xf32>
    %110 = vector.shape_cast %109 : vector<1x15x15x128xf32> to vector<15x15x128xf32>
    %111 = vector.shape_cast %108 : vector<15x15x128xf32> to vector<1x15x15x128xf32>
    tpu.vector_store %arg5[%c0_102, %c0_103, %c0_104, %c0_105], %111 {strides = array<i32>} : memref<1x16x16x128xf32, #tpu.memory_space<vmem>>, vector<1x15x15x128xf32>,
    return
  }
  func.func @transform_0(%arg0: i32, %arg1: i32) -> (i32, i32, i32, i32) {
    %c0_i32 = arith.constant 0 : i32
    %c0_i32_0 = arith.constant 0 : i32
    %c0_i32_1 = arith.constant 0 : i32
    return %arg1, %c0_i32, %c0_i32_0, %arg0 : i32, i32, i32, i32
  }
  func.func @transform_1(%arg0: i32, %arg1: i32) -> (i32, i32) {
    %c0_i32 = arith.constant 0 : i32
    %c0_i32_0 = arith.constant 0 : i32
    return %c0_i32, %arg0 : i32, i32
  }
  func.func @transform_2(%arg0: i32, %arg1: i32) -> (i32, i32) {
    %c0_i32 = arith.constant 0 : i32
    %c0_i32_0 = arith.constant 0 : i32
    return %c0_i32, %arg0 : i32, i32
  }
  func.func @transform_3(%arg0: i32, %arg1: i32) -> (i32, i32, i32, i32) {
    %c0_i32 = arith.constant 0 : i32
    %c0_i32_0 = arith.constant 0 : i32
    %c0_i32_1 = arith.constant 0 : i32
    return %arg1, %c0_i32, %c0_i32_0, %arg0 : i32, i32, i32, i32
  }
}

</mosaic_0001>

<bundles_post_ra>
// kernel: lpu_forward.1
= control target key start
LH: loop header
LB: loop body
LE: loop exit
PB: predicated region body
PF: predicated region fallthrough
CT: control target
= control target key end

     0   :  { %8 = vsyncpa [#allocation3], 0  ;;  %s3799_s0 = inlined_call_operand.hbm [shape: f32[2,16,16,128], index: 0, kind: input, shape index: {}]   ;;  %s3800_s1 = inlined_call_operand.vmem [shape: f32[9,128], index: 1, kind: input, shape index: {}]   ;;  %s3801_s2 = inlined_call_operand.vmem [shape: f32[1,128], index: 2, kind: input, shape index: {}]   ;;  %s3802_s3 = inlined_call_operand.hbm [shape: f32[2,16,16,128], index: 3, kind: output, shape index: {}]  }
   0x1   :  { %10 = vsyncpa [#allocation3 + $0x1], 0 }
   0x2   :  { %11 = vsyncpa [#allocation4], 0 }
   0x3   :  { %13 = vsyncpa [#allocation4 + $0x1], 0  ;;  %s2257_s12 = smov 0   ;;  %s2259_s13 = smov 0  }
   0x4   :  { %s2261_s14 = smov 0   ;;  %s2263_s15 = smov 0  }
   0x5   :  { %s2265_s16 = smov 0   ;;  %s2267_s17 = smov 0  }
   0x6 LB: > { %s1760_s18 = sadd.s32 4294967295, %s2229_s17   ;;  %s1761_s19 = sadd.s32 4294967294, %s2229_s17   ;;  %s2229_s17 = sphi %s2267_s17, %s19_s17   ;;  %s2225_s16 = sphi %s2265_s16, %s3832_s16   ;;  %s2221_s15 = sphi %s2263_s15, %s3831_s15   ;;  %s2217_s14 = sphi %s2261_s14, %s3830_s14   ;;  %s2213_s13 = sphi %s2259_s13, %s3829_s13   ;;  %s2209_s12 = sphi %s2257_s12, %s3828_s12  }
   0x7   : > { %s28_s20 = sadd.s32 1, %s2225_s16  ;;  %s40_s21 = sadd.s32 1, %s2217_s14 }
   0x8   : > { %p29_p0 = scmp.ge.s32.totalorder %s28_s20, 2  ;;  %p47_p1 = scmp.ne.s32.totalorder %s2217_s14, %s2213_s13 }
   0x9   : > { %p48_p2 = scmp.eq.s32.totalorder %s2229_s17, 0  ;;  %p53_p3 = scmp.ne.s32.totalorder %s2213_s13, %s2209_s12 }
   0xa   : > { %s3834_s20 = smov (%p29_p0, %s28_s20), 0  ;;  %p54_p5 = scmp.eq.s32.totalorder %s1760_s18, 0 }
   0xb   : > { %p2298_p4 = por %p48_p2, %p47_p1  ;;  %s35_s23 = ssub.s32 %s2225_s16, %s3834_s20 }
   0xc   : > { %p131_p6 = scmp.eq.s32.totalorder %s1760_s18, 1  ;;  %p38_p7 = scmp.eq.s32.totalorder %s35_s23, 0 }
   0xd   : > { %p2304_p8 = por %p54_p5, %p53_p3  ;;  %p137_p10 = scmp.eq.s32.totalorder %s1761_s19, 1 }
   0xe   : > { %p2308_p9 = por %p131_p6, %p47_p1  ;;  %p2063_p13 = scmp.lt.s32.totalorder %s2229_s17, 2 }
   0xf   : > { %s2313_s26 = scalar_select %p38_p7, %s2217_s14, %s40_s21  }
  0x10   : > { %s3811_s25 = scalar_select %p2308_p9, 1, 0 }
  0x11   : > { %p2315_p11 = por %p137_p10, %p53_p3  ;;  %s170_s28 = sand.u32 1, %s2217_s14  }
  0x12   : > { %s1766_s29 = sshll.u32 %s170_s28, 8  ;;  %s2049_s30 = sshll.u32 %s2225_s16, 12 }
  0x13   : > { %s3812_s27 = scalar_select %p2315_p11, 1, 0 }
  0x14   : > { %s2326_s6 = scalar_lea.hbm %s3799_s0, %s2049_s30  ;;  %s174_s7 = scalar_lea.vmem [#allocation2], %s1766_s29 }
  0x15   : > { %s182_s8 = sshll.u32 %s174_s7, 4  ;;  %p2332_p0 = pnand %p2063_p13, %p2298_p4  ;;  %s2328_s8 = int_to_ptr.vmem [resolvable:$true] %s182_s8 }
  0x16   : > { %s2337_s10 = scalar_lea.sflag [#allocation3], %s170_s28  ;;  %s2117_s11 = scalar_lea.hbm %s2326_s6, 4096 }
  0x17   : > { %p2118_p2 = scmp.ne.s32.totalorder %s2326_s6, %s2117_s11  ;;  %p2119_p3 = pneg %p2332_p0 }
  0x18   : > { %s2122_s21 = scalar_lea.hbm %s3799_s0, 8192  ;;  %p2123_p4 = scmp.lt.u32.totalorder %s2326_s6, %s3799_s0 }
  0x19   : > { %p2120_p5 = pnand %p2119_p3, %p2118_p2  ;;  %p2124_p7 = scmp.lt.u32.totalorder %s2122_s21, %s2117_s11 }
  0x1a   : > { %p2126_p13 = scmp.lt.u32.totalorder %s2117_s11, %s2326_s6 }
  0x1b   : > { %p2121_p6 = pneg %p2120_p5  ;;  %p2125_p10 = por %p2124_p7, %p2123_p4 }
  0x1d   : > { %p2127_p12 = por %p2126_p13, %p2125_p10 }
  0x1f   : > { %p2128_p1 = pnand %p2127_p12, %p2121_p6 }
  0x21   : > { %2131 = shalt.err (!%p2128_p1)
}
  0x22   : > { %s2132_s28 = scalar_lea.vmem %s2328_s8, 4096  ;;  %s2231_s29 = smov [#allocation2]  }
  0x23   : > { %p2133_p2 = scmp.ne.s32.totalorder %s2328_s8, %s2132_s28  ;;  %s2137_s30 = sshll.u32 %s2231_s29, 4  ;;  %s2138_s30 = int_to_ptr.vmem [resolvable:$false] %s2137_s30 }
  0x24   : > { %s2139_s4 = scalar_lea.vmem %s2138_s30, 8192  ;;  %p2140_p9 = scmp.lt.s32.totalorder %s2328_s8, %s2138_s30 }
  0x25   : > { %p2135_p5 = pnand %p2133_p2, %p2119_p3  ;;  %p2141_p4 = scmp.lt.s32.totalorder %s2139_s4, %s2132_s28 }
  0x27   : > { %p2136_p11 = pneg %p2135_p5  ;;  %p2142_p7 = por %p2141_p4, %p2140_p9 }
  0x29   : > { %p2143_p10 = pnand %p2142_p7, %p2136_p11 }
  0x2b   : > { %2146 = shalt.err (!%p2143_p10)
}
  0x2c   : > { %s2232_s5 = smov 128   ;;  %s2233_s7 = smov 8  }
  0x2d   : > { %2058 = dma.hbm_to_vmem [thread:$0]  (!%p2332_p0), %s2326_s6, 4096, %s2328_s8, %s2337_s10, %s2232_s5, %s2232_s5, %s2233_s7  }
  0x2e   : > { %p190_p12 = scmp.lt.s32.totalorder %s2229_s17, 3  ;;  %p3814_p1 = scmp.ge.s32.totalorder %s2229_s17, 1 }
  0x30   : > { %p191_p3 = pnand %p3814_p1, %p190_p12 }
  0x32   : > { %194 = sbr.rel (%p191_p3) target bundleno = 260 (0x104), region = 32 }
  0x39   : > { %s2369_s11 = sand.u32 1, %s2213_s13  }
  0x3a   : > { %s1770_s18 = sshll.u32 %s2369_s11, 8  ;;  %s197_s19 = scalar_lea.sflag [#allocation3], %s2369_s11 }
  0x3b   : > { %s2375_s21 = scalar_lea.vmem [#allocation2], %s1770_s18 }
  0x3c   : > { %2200 = dma.done.wait (%p2304_p8), %s197_s19, 4096  }
  0x3d   : > { %2202 = vsyncadd (%p2304_p8), %s197_s19, 4294963200  ;;  %v273_v0 = vlaneseq  ;;  %v237_v10 = vld [vmem:[%s3800_s1] sm:$0xff]  ;;  %v242_v11 = vld [vmem:[%s2375_s21 + $0x10] sm:$0xff]  ;;  %s2498_s10 = scalar_lea.vmem [#allocation5], %s1770_s18  ;;  %s2050_s28 = sshll.u32 %s2221_s15, 12 }
  0x3e   : > { %v272_v12 = vadd.f32 1.0, %v237_v10  ;;  %v243_v13 = vld [vmem:[%s2375_s21 + $0x18] sm:$0xff]  ;;  %v2387_v14 = vld [vmem:[%s2375_s21 + $0x20] sm:$0xff]  ;;  %v2396_v18 = vld [vmem:[%s2375_s21 + $0x28] sm:$0xff]  ;;  %s1648_s29 = sshll.u32 %s2498_s10, 4  ;;  %s3744_s4 = scalar_lea.hbm %s3802_s3, %s2050_s28  ;;  %s3746_s29 = int_to_ptr.vmem [resolvable:$true] %s1648_s29 }
  0x3f   : > { %v274_v1 = vshrl.u32 %v273_v0, 7  ;;  %v2399_v19 = vld [vmem:[%s2375_s21 + $0x30] sm:$0xff]  ;;  %v2402_v20 = vld [vmem:[%s2375_s21 + $0x38] sm:$0xff]  ;;  %v2415_v26 = vld [vmem:[%s2375_s21 + $0x40] sm:$0xff]  ;;  %s1634_s5 = scalar_lea.sflag [#allocation4], %s2369_s11  ;;  %s2147_s7 = scalar_lea.vmem %s3746_s29, 4096 }
  0x40   : > { %v2418_v27 = vld [vmem:[%s2375_s21 + $0x48] sm:$0xff]  ;;  %v2421_v28 = vld [vmem:[%s2375_s21 + $0x50] sm:$0xff]  ;;  %v2437_v32 = vld [vmem:[%s3801_s2] ss:$0 sm:$0xff]  ;;  %p2148_p8 = scmp.ne.s32.totalorder %s3746_s29, %s2147_s7  ;;  %p3825_p9 = scmp.ne.s32.totalorder %s3811_s25, 0 }
  0x41   : > { %v442_v2 = vsub.s32 0, %v274_v1  ;;  %v596_v3 = vsub.s32 1, %v274_v1  ;;  %v908_v4 = vsub.s32 3, %v274_v1  ;;  %v750_v5 = vsub.s32 2, %v274_v1  ;;  %v2460_v41 = vld [vmem:[%s2375_s21 + $0x58] sm:$0xff]  ;;  %v2471_v46 = vld [vmem:[%s2375_s21 + $0x60] sm:$0xff] }
  0x42   : > { %v1072_v6 = vsub.s32 5, %v274_v1  ;;  %v1233_v7 = vsub.s32 6, %v274_v1  ;;  %v1387_v8 = vsub.s32 7, %v274_v1  ;;  %v275_v9 = vsub.s32 4, %v274_v1  ;;  %v2474_v47 = vld [vmem:[%s2375_s21 + $0x68] sm:$0xff]  ;;  %v2477_v48 = vld [vmem:[%s2375_s21 + $0x70] sm:$0xff]  ;;  %p2149_p11 = pnand %p2148_p8, %p3825_p9 }
  0x43   : > { %v2389_v15 = vrot.slane %v237_v10, %v442_v2  ;;  %v2391_v16 = vrot.slane %v237_v10, %v596_v3  ;;  %v2393_v17 = vrot.slane %v237_v10, %v908_v4  ;;  %v2404_v21 = vrot.slane %v237_v10, %v750_v5  ;;  %v2484_v53 = vld [vmem:[%s2375_s21 + $0x78] sm:$0xff]  ;;  %v2487_v54 = vld [vmem:[%s2375_s21 + $0x80] sm:$0xff]  ;;  %v2490_v55 = vld [vmem:[%s2375_s21 + $0x88] sm:$0xff]  ;;  %s2234_s18 = smov [#allocation5]  }
  0x44   : > { %v2406_v22 = vrot.slane %v237_v10, %v1072_v6  ;;  %v2408_v23 = vrot.slane %v237_v10, %v1233_v7  ;;  %v2410_v24 = vrot.slane %v237_v10, %v1387_v8  ;;  %v2412_v25 = vrot.slane %v272_v12, %v275_v9  ;;  %v2513_v0 = vld [vmem:[%s2375_s21 + $0x90] sm:$0xff]  ;;  %v2516_v1 = vld [vmem:[%s2375_s21 + $0x98] sm:$0xff]  ;;  %v2531_v6 = vld [vmem:[%s2375_s21 + $0xa0] sm:$0xff]  ;;  %p2150_p0 = pneg %p2149_p11  ;;  %s2151_s19 = sshll.u32 %s2234_s18, 4  ;;  %s2152_s19 = int_to_ptr.vmem [resolvable:$false] %s2151_s19 }
  0x45   : > { %3815 = vst [vmem:[#allocation8_spill] sm:$0xff] %v2404_v21  ;;  %v2424_v29 = vmul.f32 %v2389_v15, %v242_v11  ;;  %v2428_v30 = vmul.f32 %v2389_v15, %v2387_v14  ;;  %v2432_v31 = vmul.f32 %v2389_v15, %v2399_v19  ;;  %v2441_v33 = vmul.f32 %v2389_v15, %v2415_v26  ;;  %v2534_v7 = vld [vmem:[%s2375_s21 + $0xa8] sm:$0xff]  ;;  %v2537_v8 = vld [vmem:[%s2375_s21 + $0xb0] sm:$0xff]  ;;  %p2154_p6 = scmp.lt.s32.totalorder %s3746_s29, %s2152_s19 }
  0x46   : > { %3816 = vst [vmem:[#allocation9_spill] sm:$0xff] %v2406_v22  ;;  %3817 = vst [vmem:[#allocation10_spill] sm:$0xff] %v2408_v23  ;;  %v2445_v34 = vmul.f32 %v2389_v15, %v2421_v28  ;;  %v2448_v35 = vmul.f32 %v2391_v16, %v242_v11  ;;  %v2451_v36 = vmul.f32 %v2391_v16, %v243_v13 }
  0x47   : > { %3818 = vst [vmem:[#allocation11_spill] sm:$0xff] %v2410_v24  ;;  %v279_v37 = vmul.f32 %v2412_v25, %v242_v11  ;;  %v280_v38 = vmul.f32 %v2412_v25, %v243_v13  ;;  %v281_v39 = vmul.f32 %v2412_v25, %v2387_v14  ;;  %v282_v40 = vmul.f32 %v2412_v25, %v2396_v18  ;;  %v2544_v13 = vld [vmem:[%s2375_s21 + $0xb8] sm:$0xff] }
  0x48   : > { %v283_v42 = vmul.f32 %v2412_v25, %v2399_v19  ;;  %v284_v43 = vmul.f32 %v2412_v25, %v2402_v20  ;;  %v285_v44 = vmul.f32 %v2412_v25, %v2415_v26  ;;  %v286_v45 = vmul.f32 %v2412_v25, %v2418_v27 }
  0x49   : > { %v317_v49 = vadd.f32 %v2437_v32, %v279_v37  ;;  %v318_v50 = vadd.f32 %v2437_v32, %v280_v38  ;;  %v319_v51 = vadd.f32 %v2437_v32, %v281_v39  ;;  %v320_v52 = vadd.f32 %v2437_v32, %v282_v40  ;;  %v2547_v37 = vld [vmem:[%s2375_s21 + $0xc0] sm:$0xff]  ;;  %v2550_v38 = vld [vmem:[%s2375_s21 + $0xc8] sm:$0xff] }
  0x4a   : > { %v321_v56 = vadd.f32 %v2437_v32, %v283_v42  ;;  %v322_v57 = vadd.f32 %v2437_v32, %v284_v43  ;;  %v323_v58 = vadd.f32 %v2437_v32, %v285_v44  ;;  %v324_v59 = vadd.f32 %v2437_v32, %v286_v45 }
  0x4b   : > { %349 = vst [vmem:[%s2498_s10 + $0x10] sm:$0xff] %v317_v49  ;;  %350 = vst [vmem:[%s2498_s10 + $0x18] sm:$0xff] %v318_v50  ;;  %v287_v60 = vmul.f32 %v2412_v25, %v2421_v28  ;;  %v288_v61 = vmul.f32 %v2412_v25, %v2460_v41  ;;  %v289_v62 = vmul.f32 %v2412_v25, %v2471_v46 }
  0x4c   : > { %351 = vst [vmem:[%s2498_s10 + $0x20] sm:$0xff] %v319_v51  ;;  %352 = vst [vmem:[%s2498_s10 + $0x28] sm:$0xff] %v320_v52  ;;  %v290_v63 = vmul.f32 %v2412_v25, %v2474_v47  ;;  %v291_v2 = vmul.f32 %v2412_v25, %v2477_v48  ;;  %v292_v3 = vmul.f32 %v2412_v25, %v2484_v53  ;;  %v2569_v51 = vld [vmem:[%s2375_s21 + $0xd0] sm:$0xff]  ;;  %v2572_v52 = vld [vmem:[%s2375_s21 + $0xd8] sm:$0xff] }
  0x4d   : > { %353 = vst [vmem:[%s2498_s10 + $0x30] sm:$0xff] %v321_v56  ;;  %354 = vst [vmem:[%s2498_s10 + $0x38] sm:$0xff] %v322_v57  ;;  %v293_v4 = vmul.f32 %v2412_v25, %v2487_v54  ;;  %v294_v5 = vmul.f32 %v2412_v25, %v2490_v55  ;;  %v325_v9 = vadd.f32 %v2437_v32, %v287_v60  ;;  %v2587_v60 = vld [vmem:[%s2375_s21 + $0xe0] sm:$0xff] }
  0x4e   : > { %355 = vst [vmem:[%s2498_s10 + $0x40] sm:$0xff] %v323_v58  ;;  %356 = vst [vmem:[%s2498_s10 + $0x48] sm:$0xff] %v324_v59  ;;  %v326_v10 = vadd.f32 %v2437_v32, %v288_v61  ;;  %v327_v11 = vadd.f32 %v2437_v32, %v289_v62  ;;  %v328_v12 = vadd.f32 %v2437_v32, %v290_v63  ;;  %v2590_v61 = vld [vmem:[%s2375_s21 + $0xe8] sm:$0xff]  ;;  %v2593_v62 = vld [vmem:[%s2375_s21] sm:$0xff] }
  0x4f   : > { %v329_v39 = vadd.f32 %v2437_v32, %v291_v2  ;;  %v330_v40 = vadd.f32 %v2437_v32, %v292_v3  ;;  %v331_v42 = vadd.f32 %v2437_v32, %v293_v4  ;;  %v332_v43 = vadd.f32 %v2437_v32, %v294_v5  ;;  %357 = vst [vmem:[%s2498_s10 + $0x50] sm:$0xff] %v325_v9  ;;  %v2600_v5 = vld [vmem:[%s2375_s21 + $0x8] sm:$0xff]  ;;  %v270_v9 = vld [vmem:[%s2375_s21 + $0xf0] sm:$0xff] }
  0x50   : > { %358 = vst [vmem:[%s2498_s10 + $0x58] sm:$0xff] %v326_v10  ;;  %359 = vst [vmem:[%s2498_s10 + $0x60] sm:$0xff] %v327_v11  ;;  %v295_v44 = vmul.f32 %v2412_v25, %v2513_v0  ;;  %v296_v45 = vmul.f32 %v2412_v25, %v2516_v1  ;;  %v297_v49 = vmul.f32 %v2412_v25, %v2531_v6  ;;  %v271_v10 = vld [vmem:[%s2375_s21 + $0xf8] sm:$0xff] }
  0x51   : > { %360 = vst [vmem:[%s2498_s10 + $0x68] sm:$0xff] %v328_v12  ;;  %v298_v50 = vmul.f32 %v2412_v25, %v2534_v7  ;;  %361 = vst [vmem:[%s2498_s10 + $0x70] sm:$0xff] %v329_v39  ;;  %v299_v56 = vmul.f32 %v2412_v25, %v2537_v8  ;;  %v300_v57 = vmul.f32 %v2412_v25, %v2544_v13 }
  0x52   : > { %362 = vst [vmem:[%s2498_s10 + $0x78] sm:$0xff] %v330_v40  ;;  %363 = vst [vmem:[%s2498_s10 + $0x80] sm:$0xff] %v331_v42  ;;  %v301_v58 = vmul.f32 %v2412_v25, %v2547_v37  ;;  %v302_v59 = vmul.f32 %v2412_v25, %v2550_v38  ;;  %v333_v63 = vadd.f32 %v2437_v32, %v295_v44 }
  0x53   : > { %364 = vst [vmem:[%s2498_s10 + $0x88] sm:$0xff] %v332_v43  ;;  %3819 = vst [vmem:[#allocation12_spill] sm:$0xff] %v2590_v61  ;;  %v334_v2 = vadd.f32 %v2437_v32, %v296_v45  ;;  %v335_v3 = vadd.f32 %v2437_v32, %v297_v49  ;;  %v336_v4 = vadd.f32 %v2437_v32, %v298_v50  ;;  %v380_v49 = vld [vmem:[%s2375_s21 + $0x8] sm:$0x7f]  ;;  %v382_v50 = vld [vmem:[%s2375_s21 + $0x18] sm:$0x7f] }
  0x54   : > { %v337_v11 = vadd.f32 %v2437_v32, %v299_v56  ;;  %v338_v12 = vadd.f32 %v2437_v32, %v300_v57  ;;  %v339_v39 = vadd.f32 %v2437_v32, %v301_v58  ;;  %v340_v40 = vadd.f32 %v2437_v32, %v302_v59  ;;  %365 = vst [vmem:[%s2498_s10 + $0x90] sm:$0xff] %v333_v63  ;;  %v1775_v63 = vld [vmem:[%s2498_s10 + $0x21] sm:$0xff] }
  0x55   : > { %366 = vst [vmem:[%s2498_s10 + $0x98] sm:$0xff] %v334_v2  ;;  %367 = vst [vmem:[%s2498_s10 + $0xa0] sm:$0xff] %v335_v3  ;;  %v303_v42 = vmul.f32 %v2412_v25, %v2569_v51  ;;  %v304_v43 = vmul.f32 %v2412_v25, %v2572_v52  ;;  %v305_v44 = vmul.f32 %v2412_v25, %v2587_v60  ;;  %v384_v2 = vld [vmem:[%s2375_s21 + $0x28] sm:$0x7f]  ;;  %v386_v3 = vld [vmem:[%s2375_s21 + $0x38] sm:$0x7f] }
  0x56   : > { %368 = vst [vmem:[%s2498_s10 + $0xa8] sm:$0xff] %v336_v4  ;;  %v306_v45 = vmul.f32 %v2412_v25, %v2590_v61  ;;  %369 = vst [vmem:[%s2498_s10 + $0xb0] sm:$0xff] %v337_v11  ;;  %v277_v56 = vmul.f32 %v2412_v25, %v2593_v62  ;;  %v278_v57 = vmul.f32 %v2412_v25, %v2600_v5  ;;  %v1780_v21 = vld [vmem:[%s2498_s10 + $0x49] sm:$0x7f] }
  0x57   : > { %370 = vst [vmem:[%s2498_s10 + $0xb8] sm:$0xff] %v338_v12  ;;  %371 = vst [vmem:[%s2498_s10 + $0xc0] sm:$0xff] %v339_v39  ;;  %v307_v58 = vmul.f32 %v2412_v25, %v270_v9  ;;  %v308_v59 = vmul.f32 %v2412_v25, %v271_v10  ;;  %v341_v4 = vadd.f32 %v2437_v32, %v303_v42  ;;  %v1773_v39 = vld [vmem:[%s2498_s10 + $0x11] sm:$0xff]  ;;  %v1779_v10 = vld [vmem:[%s2498_s10 + $0x41] sm:$0xff] }
  0x58   : > { %372 = vst [vmem:[%s2498_s10 + $0xc8] sm:$0xff] %v340_v40  ;;  %v342_v11 = vadd.f32 %v2437_v32, %v304_v43  ;;  %v343_v12 = vadd.f32 %v2437_v32, %v305_v44  ;;  %v344_v9 = vadd.f32 %v2437_v32, %v306_v45  ;;  %v1777_v25 = vld [vmem:[%s2498_s10 + $0x31] sm:$0xff]  ;;  %v388_v40 = vld [vmem:[%s2375_s21 + $0x48] sm:$0x7f]  ;;  %v315_v24 = vadd.f32 %v2437_v32, %v277_v56  ;;  %v1774_v44 = vld [vmem:[%s2498_s10 + $0x19] sm:$0x7f] }
  0x59   : > { %v316_v23 = vadd.f32 %v2437_v32, %v278_v57  ;;  %v345_v42 = vadd.f32 %v2437_v32, %v307_v58  ;;  %v346_v43 = vadd.f32 %v2437_v32, %v308_v59  ;;  %v1776_v45 = vld [vmem:[%s2498_s10 + $0x29] sm:$0x7f]  ;;  %v1781_v22 = vld [vmem:[%s2498_s10 + $0x51] sm:$0xff]  ;;  %373 = vst [vmem:[%s2498_s10 + $0xd0] sm:$0xff] %v341_v4  ;;  %v444_v56 = vmul.f32 %v2389_v15, %v2593_v62  ;;  %v1778_v59 = vld [vmem:[%s2498_s10 + $0x39] sm:$0x7f] }
  0x5a   : > { %374 = vst [vmem:[%s2498_s10 + $0xd8] sm:$0xff] %v342_v11  ;;  %375 = vst [vmem:[%s2498_s10 + $0xe0] sm:$0xff] %v343_v12  ;;  %v445_v57 = vmul.f32 %v2389_v15, %v380_v49  ;;  %v476_v32 = vadd.f32 %v1775_v63, %v2424_v29  ;;  %v447_v58 = vmul.f32 %v2389_v15, %v382_v50  ;;  %v1783_v61 = vld [vmem:[%s2498_s10 + $0x61] sm:$0xff]  ;;  %v390_v63 = vld [vmem:[%s2375_s21 + $0x58] sm:$0x7f] }
  0x5b   : > { %376 = vst [vmem:[%s2498_s10 + $0xe8] sm:$0xff] %v344_v9  ;;  %347 = vst [vmem:[%s2498_s10] sm:$0xff] %v315_v24  ;;  %v478_v4 = vadd.f32 %v1777_v25, %v2428_v30  ;;  %v449_v49 = vmul.f32 %v2389_v15, %v384_v2  ;;  %v480_v29 = vadd.f32 %v1779_v10, %v2432_v31  ;;  %v392_v11 = vld [vmem:[%s2375_s21 + $0x68] sm:$0x7f]  ;;  %v394_v24 = vld [vmem:[%s2375_s21 + $0x78] sm:$0x7f] }
  0x5c   : > { %348 = vst [vmem:[%s2498_s10 + $0x8] sm:$0xff] %v316_v23  ;;  %377 = vst [vmem:[%s2498_s10 + $0xf0] sm:$0xff] %v345_v42  ;;  %v451_v50 = vmul.f32 %v2389_v15, %v386_v3  ;;  %v474_v23 = vadd.f32 %v1773_v39, %v444_v56  ;;  %v475_v12 = vadd.f32 %v1774_v44, %v445_v57  ;;  %v1782_v2 = vld [vmem:[%s2498_s10 + $0x59] sm:$0x7f]  ;;  %v1784_v31 = vld [vmem:[%s2498_s10 + $0x69] sm:$0x7f] }
  0x5d   : > { %378 = vst [vmem:[%s2498_s10 + $0xf8] sm:$0xff] %v346_v43  ;;  %1805 = vst [vmem:[%s2498_s10 + $0x21] sm:$0xff] %v476_v32  ;;  %v477_v9 = vadd.f32 %v1776_v45, %v447_v58  ;;  %v482_v30 = vadd.f32 %v1781_v22, %v2441_v33  ;;  %v396_v25 = vld [vmem:[%s2375_s21 + $0x88] sm:$0x7f]  ;;  %v479_v3 = vadd.f32 %v1778_v59, %v449_v49  ;;  %v1785_v43 = vld [vmem:[%s2498_s10 + $0x71] sm:$0xff] }
  0x5e   : > { %1807 = vst [vmem:[%s2498_s10 + $0x31] sm:$0xff] %v478_v4  ;;  %1809 = vst [vmem:[%s2498_s10 + $0x41] sm:$0xff] %v480_v29  ;;  %v481_v10 = vadd.f32 %v1780_v21, %v451_v50  ;;  %v453_v39 = vmul.f32 %v2389_v15, %v388_v40  ;;  %v484_v42 = vadd.f32 %v1783_v61, %v2445_v34  ;;  %v1786_v44 = vld [vmem:[%s2498_s10 + $0x79] sm:$0x7f]  ;;  %v1787_v22 = vld [vmem:[%s2498_s10 + $0x81] sm:$0xff] }
  0x5f   : > { %1803 = vst [vmem:[%s2498_s10 + $0x11] sm:$0xff] %v474_v23  ;;  %1804 = vst [vmem:[%s2498_s10 + $0x19] sm:$0x7f] %v475_v12  ;;  %v455_v33 = vmul.f32 %v2389_v15, %v390_v63  ;;  %v456_v21 = vmul.f32 %v2389_v15, %v2471_v46  ;;  %v457_v40 = vmul.f32 %v2389_v15, %v392_v11  ;;  %v1788_v61 = vld [vmem:[%s2498_s10 + $0x89] sm:$0x7f]  ;;  %v1789_v45 = vld [vmem:[%s2498_s10 + $0x91] sm:$0xff] }
  0x60   : > { %1806 = vst [vmem:[%s2498_s10 + $0x29] sm:$0x7f] %v477_v9  ;;  %1811 = vst [vmem:[%s2498_s10 + $0x51] sm:$0xff] %v482_v30  ;;  %v458_v34 = vmul.f32 %v2389_v15, %v2477_v48  ;;  %v1790_v56 = vld [vmem:[%s2498_s10 + $0x99] sm:$0x7f]  ;;  %v483_v57 = vadd.f32 %v1782_v2, %v453_v39  ;;  %v459_v32 = vmul.f32 %v2389_v15, %v394_v24  ;;  %v1791_v24 = vld [vmem:[%s2498_s10 + $0xa1] sm:$0xff] }
  0x61   : > { %1808 = vst [vmem:[%s2498_s10 + $0x39] sm:$0x7f] %v479_v3  ;;  %1810 = vst [vmem:[%s2498_s10 + $0x49] sm:$0x7f] %v481_v10  ;;  %v460_v58 = vmul.f32 %v2389_v15, %v2487_v54  ;;  %v461_v59 = vmul.f32 %v2389_v15, %v396_v25  ;;  %v398_v4 = vld [vmem:[%s2375_s21 + $0x98] sm:$0x7f]  ;;  %v485_v50 = vadd.f32 %v1784_v31, %v455_v33 }
  0x62   : > { %1813 = vst [vmem:[%s2498_s10 + $0x61] sm:$0xff] %v484_v42  ;;  %v400_v49 = vld [vmem:[%s2375_s21 + $0xa8] sm:$0x7f]  ;;  %v402_v29 = vld [vmem:[%s2375_s21 + $0xb8] sm:$0x7f]  ;;  %v486_v63 = vadd.f32 %v1785_v43, %v456_v21  ;;  %v487_v11 = vadd.f32 %v1786_v44, %v457_v40  ;;  %v488_v23 = vadd.f32 %v1787_v22, %v458_v34  ;;  %v489_v30 = vadd.f32 %v1788_v61, %v459_v32 }
  0x63   : > { %v1792_v12 = vld [vmem:[%s2498_s10 + $0xa9] sm:$0x7f]  ;;  %1812 = vst [vmem:[%s2498_s10 + $0x59] sm:$0x7f] %v483_v57  ;;  %v490_v2 = vadd.f32 %v1789_v45, %v460_v58  ;;  %v491_v25 = vadd.f32 %v1790_v56, %v461_v59  ;;  %v462_v31 = vmul.f32 %v2389_v15, %v2513_v0  ;;  %v1793_v3 = vld [vmem:[%s2498_s10 + $0xb1] sm:$0xff]  ;;  %v1795_v39 = vld [vmem:[%s2498_s10 + $0xc1] sm:$0xff]  ;;  %v463_v42 = vmul.f32 %v2389_v15, %v398_v4 }
  0x64   : > { %v404_v9 = vld [vmem:[%s2375_s21 + $0xc8] sm:$0x7f]  ;;  %v1794_v10 = vld [vmem:[%s2498_s10 + $0xb9] sm:$0x7f]  ;;  %1814 = vst [vmem:[%s2498_s10 + $0x69] sm:$0x7f] %v485_v50  ;;  %v464_v43 = vmul.f32 %v2389_v15, %v2531_v6  ;;  %v465_v44 = vmul.f32 %v2389_v15, %v400_v49  ;;  %v466_v22 = vmul.f32 %v2389_v15, %v2537_v8  ;;  %v467_v61 = vmul.f32 %v2389_v15, %v402_v29 }
  0x65   : > { %1815 = vst [vmem:[%s2498_s10 + $0x71] sm:$0xff] %v486_v63  ;;  %1816 = vst [vmem:[%s2498_s10 + $0x79] sm:$0x7f] %v487_v11  ;;  %v1796_v33 = vld [vmem:[%s2498_s10 + $0xc9] sm:$0x7f]  ;;  %v1797_v21 = vld [vmem:[%s2498_s10 + $0xd1] sm:$0xff]  ;;  %v492_v34 = vadd.f32 %v1791_v24, %v462_v31  ;;  %v468_v45 = vmul.f32 %v2389_v15, %v2547_v37  ;;  %v469_v56 = vmul.f32 %v2389_v15, %v404_v9 }
  0x66   : > { %1817 = vst [vmem:[%s2498_s10 + $0x81] sm:$0xff] %v488_v23  ;;  %v1798_v40 = vld [vmem:[%s2498_s10 + $0xd9] sm:$0x7f]  ;;  %1818 = vst [vmem:[%s2498_s10 + $0x89] sm:$0x7f] %v489_v30  ;;  %v1799_v57 = vld [vmem:[%s2498_s10 + $0xe1] sm:$0xff]  ;;  %v493_v59 = vadd.f32 %v1792_v12, %v463_v42  ;;  %v494_v4 = vadd.f32 %v1793_v3, %v464_v43  ;;  %v495_v49 = vadd.f32 %v1794_v10, %v465_v44 }
  0x67   : > { %1819 = vst [vmem:[%s2498_s10 + $0x91] sm:$0xff] %v490_v2  ;;  %1820 = vst [vmem:[%s2498_s10 + $0x99] sm:$0x7f] %v491_v25  ;;  %v406_v32 = vld [vmem:[%s2375_s21 + $0xd8] sm:$0x7f]  ;;  %v496_v50 = vadd.f32 %v1795_v39, %v466_v22  ;;  %v1835_v11 = vld [vmem:[%s2498_s10 + $0x20] sm:$0xff]  ;;  %v497_v23 = vadd.f32 %v1796_v33, %v467_v61  ;;  %v498_v24 = vadd.f32 %v1797_v21, %v468_v45 }
  0x68   : > { %v408_v58 = vld [vmem:[%s2375_s21 + $0xe8] sm:$0x7f]  ;;  %v1801_v63 = vld [vmem:[%s2498_s10 + $0xf1] sm:$0xff]  ;;  %1821 = vst [vmem:[%s2498_s10 + $0xa1] sm:$0xff] %v492_v34  ;;  %v499_v9 = vadd.f32 %v1798_v40, %v469_v56  ;;  %v470_v12 = vmul.f32 %v2389_v15, %v2569_v51  ;;  %v1802_v30 = vld [vmem:[%s2498_s10 + $0xf9] sm:$0x7f]  ;;  %v471_v31 = vmul.f32 %v2389_v15, %v406_v32  ;;  %v472_v3 = vmul.f32 %v2389_v15, %v2587_v60 }
  0x69   : > { %v1800_v29 = vld [vmem:[%s2498_s10 + $0xe9] sm:$0x7f]  ;;  %v1833_v2 = vld [vmem:[%s2498_s10 + $0x10] sm:$0xff]  ;;  %1822 = vst [vmem:[%s2498_s10 + $0xa9] sm:$0x7f] %v493_v59  ;;  %1823 = vst [vmem:[%s2498_s10 + $0xb1] sm:$0xff] %v494_v4  ;;  %v473_v10 = vmul.f32 %v2389_v15, %v408_v58  ;;  %v598_v39 = vmul.f32 %v2391_v16, %v2593_v62  ;;  %v599_v44 = vmul.f32 %v2391_v16, %v2600_v5 }
  0x6a   : > { %v1836_v25 = vld [vmem:[%s2498_s10 + $0x28] sm:$0xff]  ;;  %1824 = vst [vmem:[%s2498_s10 + $0xb9] sm:$0x7f] %v495_v49  ;;  %1825 = vst [vmem:[%s2498_s10 + $0xc1] sm:$0xff] %v496_v50  ;;  %v1834_v42 = vld [vmem:[%s2498_s10 + $0x18] sm:$0xff]  ;;  %v500_v43 = vadd.f32 %v1799_v57, %v470_v12  ;;  %v2766_v22 = vadd.f32 %v1835_v11, %v2448_v35  ;;  %v501_v21 = vadd.f32 %v1800_v29, %v471_v31 }
  0x6b   : > { %1826 = vst [vmem:[%s2498_s10 + $0xc9] sm:$0x7f] %v497_v23  ;;  %1827 = vst [vmem:[%s2498_s10 + $0xd1] sm:$0xff] %v498_v24  ;;  %v631_v15 = vadd.f32 %v1836_v25, %v2451_v36  ;;  %v1837_v33 = vld [vmem:[%s2498_s10 + $0x30] sm:$0xff]  ;;  %v502_v40 = vadd.f32 %v1801_v63, %v472_v3  ;;  %v503_v34 = vadd.f32 %v1802_v30, %v473_v10  ;;  %v1838_v45 = vld [vmem:[%s2498_s10 + $0x38] sm:$0xff] }
  0x6c   : > { %1828 = vst [vmem:[%s2498_s10 + $0xd9] sm:$0x7f] %v499_v9  ;;  %v2770_v61 = vadd.f32 %v1833_v2, %v598_v39  ;;  %v1839_v56 = vld [vmem:[%s2498_s10 + $0x40] sm:$0xff]  ;;  %v1840_v5 = vld [vmem:[%s2498_s10 + $0x48] sm:$0xff]  ;;  %1829 = vst [vmem:[%s2498_s10 + $0xe1] sm:$0xff] %v500_v43  ;;  %v629_v35 = vadd.f32 %v1834_v42, %v599_v44  ;;  %v602_v36 = vmul.f32 %v2391_v16, %v2387_v14 }
  0x6d   : > { %1866 = vst [vmem:[%s2498_s10 + $0x28] sm:$0xff] %v631_v15  ;;  %v603_v57 = vmul.f32 %v2391_v16, %v2396_v18  ;;  %v604_v32 = vmul.f32 %v2391_v16, %v2399_v19  ;;  %v1841_v58 = vld [vmem:[%s2498_s10 + $0x50] sm:$0xff]  ;;  %v1842_v59 = vld [vmem:[%s2498_s10 + $0x58] sm:$0xff]  ;;  %v1843_v4 = vld [vmem:[%s2498_s10 + $0x60] sm:$0xff]  ;;  %v605_v49 = vmul.f32 %v2391_v16, %v2402_v20  ;;  %v606_v14 = vmul.f32 %v2391_v16, %v2415_v26 }
  0x6e   : > { %1830 = vst [vmem:[%s2498_s10 + $0xe9] sm:$0x7f] %v501_v21  ;;  %1831 = vst [vmem:[%s2498_s10 + $0xf1] sm:$0xff] %v502_v40  ;;  %v607_v18 = vmul.f32 %v2391_v16, %v2418_v27  ;;  %v608_v19 = vmul.f32 %v2391_v16, %v2421_v28  ;;  %v1844_v50 = vld [vmem:[%s2498_s10 + $0x68] sm:$0xff]  ;;  %v2799_v29 = vadd.f32 %v1837_v33, %v602_v36  ;;  %v1845_v26 = vld [vmem:[%s2498_s10 + $0x70] sm:$0xff] }
  0x6f   : > { %1832 = vst [vmem:[%s2498_s10 + $0xf9] sm:$0x7f] %v503_v34  ;;  %1864 = vst [vmem:[%s2498_s10 + $0x18] sm:$0xff] %v629_v35  ;;  %v633_v63 = vadd.f32 %v1838_v45, %v603_v57  ;;  %v2801_v11 = vadd.f32 %v1839_v56, %v604_v32  ;;  %v609_v20 = vmul.f32 %v2391_v16, %v2460_v41  ;;  %v1846_v9 = vld [vmem:[%s2498_s10 + $0x78] sm:$0xff]  ;;  %v1847_v12 = vld [vmem:[%s2498_s10 + $0x80] sm:$0xff] }
  0x70   : > { %v635_v27 = vadd.f32 %v1840_v5, %v605_v49  ;;  %v2806_v23 = vadd.f32 %v1841_v58, %v606_v14  ;;  %v637_v28 = vadd.f32 %v1842_v59, %v607_v18  ;;  %v2808_v24 = vadd.f32 %v1843_v4, %v608_v19  ;;  %v1848_v30 = vld [vmem:[%s2498_s10 + $0x88] sm:$0xff]  ;;  %v1849_v3 = vld [vmem:[%s2498_s10 + $0x90] sm:$0xff]  ;;  %v1850_v10 = vld [vmem:[%s2498_s10 + $0x98] sm:$0xff] }
  0x71   : > { %1868 = vst [vmem:[%s2498_s10 + $0x38] sm:$0xff] %v633_v63  ;;  %v639_v2 = vadd.f32 %v1844_v50, %v609_v20  ;;  %v610_v41 = vmul.f32 %v2391_v16, %v2471_v46  ;;  %v611_v25 = vmul.f32 %v2391_v16, %v2474_v47  ;;  %v612_v31 = vmul.f32 %v2391_v16, %v2477_v48  ;;  %v1851_v39 = vld [vmem:[%s2498_s10 + $0xa0] sm:$0xff]  ;;  %v1852_v43 = vld [vmem:[%s2498_s10 + $0xa8] sm:$0xff]  ;;  %v1854_v34 = vld [vmem:[%s2498_s10 + $0xb8] sm:$0xff] }
  0x72   : > { %1870 = vst [vmem:[%s2498_s10 + $0x48] sm:$0xff] %v635_v27  ;;  %1872 = vst [vmem:[%s2498_s10 + $0x58] sm:$0xff] %v637_v28  ;;  %v613_v42 = vmul.f32 %v2391_v16, %v2484_v53  ;;  %v614_v46 = vmul.f32 %v2391_v16, %v2487_v54  ;;  %v615_v47 = vmul.f32 %v2391_v16, %v2490_v55  ;;  %v1853_v54 = vld [vmem:[%s2498_s10 + $0xb0] sm:$0xff]  ;;  %v1855_v45 = vld [vmem:[%s2498_s10 + $0xc0] sm:$0xff] }
  0x73   : > { %v616_v48 = vmul.f32 %v2391_v16, %v2513_v0  ;;  %1874 = vst [vmem:[%s2498_s10 + $0x68] sm:$0xff] %v639_v2  ;;  %v2835_v44 = vadd.f32 %v1845_v26, %v610_v41  ;;  %v641_v15 = vadd.f32 %v1846_v9, %v611_v25  ;;  %v2837_v33 = vadd.f32 %v1847_v12, %v612_v31  ;;  %v1856_v56 = vld [vmem:[%s2498_s10 + $0xc8] sm:$0xff]  ;;  %v1857_v57 = vld [vmem:[%s2498_s10 + $0xd0] sm:$0xff]  ;;  %v1858_v32 = vld [vmem:[%s2498_s10 + $0xd8] sm:$0xff] }
  0x74   : > { %v617_v53 = vmul.f32 %v2391_v16, %v2516_v1  ;;  %v643_v55 = vadd.f32 %v1848_v30, %v613_v42  ;;  %v2842_v21 = vadd.f32 %v1849_v3, %v614_v46  ;;  %v645_v0 = vadd.f32 %v1850_v10, %v615_v47  ;;  %v1859_v58 = vld [vmem:[%s2498_s10 + $0xe0] sm:$0xff]  ;;  %v843_v49 = vld [vmem:[%s2375_s21 + $0x8] sm:$0x7f]  ;;  %v691_v50 = vld [vmem:[%s2375_s21 + $0x19] sm:$0x7f] }
  0x75   : > { %v2844_v40 = vadd.f32 %v1851_v39, %v616_v48  ;;  %1876 = vst [vmem:[%s2498_s10 + $0x78] sm:$0xff] %v641_v15  ;;  %v618_v1 = vmul.f32 %v2391_v16, %v2531_v6  ;;  %v619_v35 = vmul.f32 %v2391_v16, %v2534_v7  ;;  %v620_v36 = vmul.f32 %v2391_v16, %v2537_v8  ;;  %v1860_v4 = vld [vmem:[%s2498_s10 + $0xe8] sm:$0xff]  ;;  %v1861_v12 = vld [vmem:[%s2498_s10 + $0xf0] sm:$0xff]  ;;  %v3820_v39 = vld [vmem:[#allocation12_spill] sm:$0xff] }
  0x76   : > { %v647_v5 = vadd.f32 %v1852_v43, %v617_v53  ;;  %1878 = vst [vmem:[%s2498_s10 + $0x88] sm:$0xff] %v643_v55  ;;  %1880 = vst [vmem:[%s2498_s10 + $0x98] sm:$0xff] %v645_v0  ;;  %v621_v59 = vmul.f32 %v2391_v16, %v2544_v13  ;;  %v622_v6 = vmul.f32 %v2391_v16, %v2547_v37  ;;  %v2872_v14 = vld [vmem:[%s2375_s21 + $0x1] sm:$0xff]  ;;  %v689_v19 = vld [vmem:[%s2375_s21 + $0x9] sm:$0x7f] }
  0x77   : > { %v623_v7 = vmul.f32 %v2391_v16, %v2550_v38  ;;  %v624_v8 = vmul.f32 %v2391_v16, %v2569_v51  ;;  %v2875_v13 = vadd.f32 %v1853_v54, %v618_v1  ;;  %v649_v18 = vadd.f32 %v1854_v34, %v619_v35  ;;  %v2883_v51 = vld [vmem:[%s2375_s21 + $0x11] sm:$0xff]  ;;  %v874_v28 = vld [vmem:[%s2498_s10 + $0x1] sm:$0xff]  ;;  %v875_v9 = vld [vmem:[%s2498_s10 + $0x9] sm:$0x7f] }
  0x78   : > { %1882 = vst [vmem:[%s2498_s10 + $0xa8] sm:$0xff] %v647_v5  ;;  %v2877_v37 = vadd.f32 %v1855_v45, %v620_v36  ;;  %v625_v38 = vmul.f32 %v2391_v16, %v2572_v52  ;;  %v651_v63 = vadd.f32 %v1856_v56, %v621_v59  ;;  %v2886_v20 = vadd.f32 %v1857_v57, %v622_v6  ;;  %v2894_v52 = vld [vmem:[%s2375_s21 + $0x21] sm:$0xff]  ;;  %v1862_v31 = vld [vmem:[%s2498_s10 + $0xf8] sm:$0xff]  ;;  %v693_v10 = vld [vmem:[%s2375_s21 + $0x29] sm:$0x7f] }
  0x79   : > { %v653_v26 = vadd.f32 %v1858_v32, %v623_v7  ;;  %v2888_v27 = vadd.f32 %v1859_v58, %v624_v8  ;;  %1884 = vst [vmem:[%s2498_s10 + $0xb8] sm:$0xff] %v649_v18  ;;  %v910_v2 = vmul.f32 %v2393_v17, %v2593_v62  ;;  %v911_v41 = vmul.f32 %v2393_v17, %v843_v49  ;;  %v1894_v3 = vld [vmem:[%s2498_s10 + $0x18] sm:$0x7f]  ;;  %v3821_v46 = vld [vmem:[#allocation8_spill] sm:$0xff]  ;;  %v697_v34 = vld [vmem:[%s2375_s21 + $0x49] sm:$0x7f] }
  0x7a   : > { %v655_v30 = vadd.f32 %v1860_v4, %v625_v38  ;;  %v626_v25 = vmul.f32 %v2391_v16, %v2587_v60  ;;  %1886 = vst [vmem:[%s2498_s10 + $0xc8] sm:$0xff] %v651_v63  ;;  %v627_v42 = vmul.f32 %v2391_v16, %v3820_v39  ;;  %v752_v47 = vmul.f32 %v3821_v46, %v2872_v14  ;;  %v1896_v60 = vld [vmem:[%s2498_s10 + $0x28] sm:$0x7f]  ;;  %v2916_v43 = vld [vmem:[%s2375_s21 + $0x31] sm:$0xff]  ;;  %v695_v15 = vld [vmem:[%s2375_s21 + $0x39] sm:$0x7f] }
  0x7b   : > { %1888 = vst [vmem:[%s2498_s10 + $0xd8] sm:$0xff] %v653_v26  ;;  %v753_v62 = vmul.f32 %v3821_v46, %v689_v19  ;;  %v754_v48 = vmul.f32 %v3821_v46, %v2883_v51  ;;  %v942_v53 = vadd.f32 %v910_v2, %v874_v28  ;;  %v943_v16 = vadd.f32 %v911_v41, %v875_v9  ;;  %v2924_v0 = vld [vmem:[%s2375_s21 + $0x41] sm:$0xff]  ;;  %v2928_v45 = vld [vmem:[%s2375_s21 + $0x51] sm:$0xff]  ;;  %v699_v57 = vld [vmem:[%s2375_s21 + $0x59] sm:$0x7f] }
  0x7c   : > { %1890 = vst [vmem:[%s2498_s10 + $0xe8] sm:$0xff] %v655_v30  ;;  %v2920_v54 = vadd.f32 %v1861_v12, %v626_v25  ;;  %v755_v55 = vmul.f32 %v3821_v46, %v691_v50  ;;  %v657_v56 = vadd.f32 %v1862_v31, %v627_v42  ;;  %v782_v5 = vadd.f32 %v752_v47, %v2770_v61  ;;  %v1898_v36 = vld [vmem:[%s2498_s10 + $0x38] sm:$0x7f]  ;;  %v2935_v32 = vld [vmem:[%s2375_s21 + $0x61] sm:$0xff]  ;;  %v701_v8 = vld [vmem:[%s2375_s21 + $0x69] sm:$0x7f] }
  0x7d   : > { %v783_v1 = vadd.f32 %v1894_v3, %v753_v62  ;;  %v784_v35 = vadd.f32 %v754_v48, %v2766_v22  ;;  %974 = vst [vmem:[%s2498_s10 + $0x1] sm:$0xff] %v942_v53  ;;  %975 = vst [vmem:[%s2498_s10 + $0x9] sm:$0x7f] %v943_v16  ;;  %v756_v59 = vmul.f32 %v3821_v46, %v2894_v52  ;;  %v1900_v6 = vld [vmem:[%s2498_s10 + $0x48] sm:$0x7f]  ;;  %v2959_v50 = vld [vmem:[%s2375_s21 + $0x71] sm:$0xff] }
  0x7e   : > { %v785_v58 = vadd.f32 %v1896_v60, %v755_v55  ;;  %v757_v61 = vmul.f32 %v3821_v46, %v693_v10  ;;  %v758_v22 = vmul.f32 %v3821_v46, %v2916_v43  ;;  %v1902_v7 = vld [vmem:[%s2498_s10 + $0x58] sm:$0x7f]  ;;  %1892 = vst [vmem:[%s2498_s10 + $0xf8] sm:$0xff] %v657_v56  ;;  %1923 = vst [vmem:[%s2498_s10 + $0x10] sm:$0xff] %v782_v5  ;;  %v1904_v19 = vld [vmem:[%s2498_s10 + $0x68] sm:$0x7f] }
  0x7f   : > { %1924 = vst [vmem:[%s2498_s10 + $0x18] sm:$0x7f] %v783_v1  ;;  %1925 = vst [vmem:[%s2498_s10 + $0x20] sm:$0xff] %v784_v35  ;;  %v759_v4 = vmul.f32 %v3821_v46, %v695_v15  ;;  %v760_v49 = vmul.f32 %v3821_v46, %v2924_v0  ;;  %v761_v18 = vmul.f32 %v3821_v46, %v697_v34  ;;  %v703_v63 = vld [vmem:[%s2375_s21 + $0x79] sm:$0x7f]  ;;  %v2967_v30 = vld [vmem:[%s2375_s21 + $0x81] sm:$0xff] }
  0x80   : > { %v762_v38 = vmul.f32 %v3821_v46, %v2928_v45  ;;  %1926 = vst [vmem:[%s2498_s10 + $0x28] sm:$0x7f] %v785_v58  ;;  %v786_v26 = vadd.f32 %v756_v59, %v2799_v29  ;;  %v787_v28 = vadd.f32 %v1898_v36, %v757_v61  ;;  %v788_v9 = vadd.f32 %v758_v22, %v2801_v11  ;;  %v705_v2 = vld [vmem:[%s2375_s21 + $0x89] sm:$0x7f]  ;;  %v2971_v41 = vld [vmem:[%s2375_s21 + $0x91] sm:$0xff]  ;;  %v2978_v39 = vld [vmem:[%s2375_s21 + $0xa1] sm:$0xff] }
  0x81   : > { %v763_v12 = vmul.f32 %v3821_v46, %v699_v57  ;;  %v789_v25 = vadd.f32 %v1900_v6, %v759_v4  ;;  %v790_v31 = vadd.f32 %v760_v49, %v2806_v23  ;;  %v791_v3 = vadd.f32 %v1902_v7, %v761_v18  ;;  %v1906_v11 = vld [vmem:[%s2498_s10 + $0x78] sm:$0x7f]  ;;  %v1908_v62 = vld [vmem:[%s2498_s10 + $0x88] sm:$0x7f] }
  0x82   : > { %v792_v29 = vadd.f32 %v762_v38, %v2808_v24  ;;  %v707_v10 = vld [vmem:[%s2375_s21 + $0x99] sm:$0x7f]  ;;  %1927 = vst [vmem:[%s2498_s10 + $0x30] sm:$0xff] %v786_v26  ;;  %1928 = vst [vmem:[%s2498_s10 + $0x38] sm:$0x7f] %v787_v28  ;;  %v764_v23 = vmul.f32 %v3821_v46, %v2935_v32  ;;  %v765_v47 = vmul.f32 %v3821_v46, %v701_v8  ;;  %v3003_v56 = vld [vmem:[%s2375_s21 + $0xb1] sm:$0xff] }
  0x83   : > { %1929 = vst [vmem:[%s2498_s10 + $0x40] sm:$0xff] %v788_v9  ;;  %v793_v42 = vadd.f32 %v1904_v19, %v763_v12  ;;  %v766_v24 = vmul.f32 %v3821_v46, %v2959_v50  ;;  %v1910_v48 = vld [vmem:[%s2498_s10 + $0x98] sm:$0x7f]  ;;  %v709_v60 = vld [vmem:[%s2375_s21 + $0xa9] sm:$0x7f]  ;;  %1931 = vst [vmem:[%s2498_s10 + $0x50] sm:$0xff] %v790_v31  ;;  %v767_v15 = vmul.f32 %v3821_v46, %v703_v63 }
  0x84   : > { %1930 = vst [vmem:[%s2498_s10 + $0x48] sm:$0x7f] %v789_v25  ;;  %1932 = vst [vmem:[%s2498_s10 + $0x58] sm:$0x7f] %v791_v3  ;;  %v768_v53 = vmul.f32 %v3821_v46, %v2967_v30  ;;  %v769_v16 = vmul.f32 %v3821_v46, %v705_v2  ;;  %v770_v55 = vmul.f32 %v3821_v46, %v2971_v41  ;;  %v1912_v34 = vld [vmem:[%s2498_s10 + $0xa8] sm:$0x7f] }
  0x85   : > { %1933 = vst [vmem:[%s2498_s10 + $0x60] sm:$0xff] %v792_v29  ;;  %v711_v5 = vld [vmem:[%s2375_s21 + $0xb9] sm:$0x7f]  ;;  %1934 = vst [vmem:[%s2498_s10 + $0x68] sm:$0x7f] %v793_v42  ;;  %v794_v1 = vadd.f32 %v764_v23, %v2835_v44  ;;  %v795_v35 = vadd.f32 %v1906_v11, %v765_v47  ;;  %v796_v36 = vadd.f32 %v766_v24, %v2837_v33  ;;  %v3011_v58 = vld [vmem:[%s2375_s21 + $0xc1] sm:$0xff] }
  0x86   : > { %v771_v57 = vmul.f32 %v3821_v46, %v707_v10  ;;  %v713_v59 = vld [vmem:[%s2375_s21 + $0xc9] sm:$0x7f]  ;;  %v3015_v61 = vld [vmem:[%s2375_s21 + $0xd1] sm:$0xff]  ;;  %v797_v22 = vadd.f32 %v1908_v62, %v767_v15  ;;  %v798_v6 = vadd.f32 %v768_v53, %v2842_v21  ;;  %v799_v7 = vadd.f32 %v1910_v48, %v769_v16  ;;  %v715_v8 = vld [vmem:[%s2375_s21 + $0xd9] sm:$0x7f] }
  0x87   : > { %v800_v44 = vadd.f32 %v770_v55, %v2844_v40  ;;  %v1914_v33 = vld [vmem:[%s2498_s10 + $0xb8] sm:$0x7f]  ;;  %v1007_v4 = vld [vmem:[%s2375_s21 + $0x9] sm:$0x7f]  ;;  %1935 = vst [vmem:[%s2498_s10 + $0x70] sm:$0xff] %v794_v1  ;;  %1937 = vst [vmem:[%s2498_s10 + $0x80] sm:$0xff] %v796_v36  ;;  %v772_v18 = vmul.f32 %v3821_v46, %v2978_v39  ;;  %v773_v21 = vmul.f32 %v3821_v46, %v709_v60 }
  0x88   : > { %1936 = vst [vmem:[%s2498_s10 + $0x78] sm:$0x7f] %v795_v35  ;;  %v801_v49 = vadd.f32 %v1912_v34, %v771_v57  ;;  %v774_v40 = vmul.f32 %v3821_v46, %v3003_v56  ;;  %v1916_v38 = vld [vmem:[%s2498_s10 + $0xc8] sm:$0x7f]  ;;  %v1918_v19 = vld [vmem:[%s2498_s10 + $0xd8] sm:$0x7f]  ;;  %v775_v26 = vmul.f32 %v3821_v46, %v711_v5  ;;  %v776_v28 = vmul.f32 %v3821_v46, %v3011_v58 }
  0x89   : > { %v3033_v63 = vld [vmem:[%s2375_s21 + $0xe1] sm:$0xff]  ;;  %1938 = vst [vmem:[%s2498_s10 + $0x88] sm:$0x7f] %v797_v22  ;;  %1939 = vst [vmem:[%s2498_s10 + $0x90] sm:$0xff] %v798_v6  ;;  %v777_v9 = vmul.f32 %v3821_v46, %v713_v59  ;;  %v778_v12 = vmul.f32 %v3821_v46, %v3015_v61  ;;  %v717_v25 = vld [vmem:[%s2375_s21 + $0xe9] sm:$0x7f]  ;;  %v802_v3 = vadd.f32 %v772_v18, %v2875_v13 }
  0x8a   : > { %1940 = vst [vmem:[%s2498_s10 + $0x98] sm:$0x7f] %v799_v7  ;;  %1941 = vst [vmem:[%s2498_s10 + $0xa0] sm:$0xff] %v800_v44  ;;  %v1920_v2 = vld [vmem:[%s2498_s10 + $0xe8] sm:$0x7f]  ;;  %v3048_v31 = vld [vmem:[%s2375_s21 + $0x10] sm:$0xff]  ;;  %v803_v29 = vadd.f32 %v1914_v33, %v773_v21  ;;  %v804_v11 = vadd.f32 %v774_v40, %v2877_v37  ;;  %v779_v10 = vmul.f32 %v3821_v46, %v715_v8 }
  0x8b   : > { %1942 = vst [vmem:[%s2498_s10 + $0xa8] sm:$0x7f] %v801_v49  ;;  %v845_v42 = vld [vmem:[%s2375_s21 + $0x18] sm:$0x7f]  ;;  %v3056_v23 = vld [vmem:[%s2375_s21 + $0x20] sm:$0xff]  ;;  %v805_v24 = vadd.f32 %v1916_v38, %v775_v26  ;;  %v806_v62 = vadd.f32 %v776_v28, %v2886_v20  ;;  %v807_v48 = vadd.f32 %v1918_v19, %v777_v9  ;;  %v808_v13 = vadd.f32 %v778_v12, %v2888_v27  ;;  %v3065_v53 = vld [vmem:[%s2375_s21 + $0x30] sm:$0xff] }
  0x8c   : > { %v847_v47 = vld [vmem:[%s2375_s21 + $0x28] sm:$0x7f]  ;;  %v1038_v60 = vld [vmem:[%s2498_s10] sm:$0xff]  ;;  %v1922_v15 = vld [vmem:[%s2498_s10 + $0xf8] sm:$0x7f]  ;;  %1943 = vst [vmem:[%s2498_s10 + $0xb0] sm:$0xff] %v802_v3  ;;  %v809_v20 = vadd.f32 %v1920_v2, %v779_v10  ;;  %v780_v1 = vmul.f32 %v3821_v46, %v3033_v63  ;;  %v912_v22 = vmul.f32 %v2393_v17, %v3048_v31  ;;  %v913_v6 = vmul.f32 %v2393_v17, %v845_v42 }
  0x8d   : > { %v1039_v37 = vld [vmem:[%s2498_s10 + $0x8] sm:$0x7f]  ;;  %v849_v16 = vld [vmem:[%s2375_s21 + $0x38] sm:$0x7f]  ;;  %v3069_v55 = vld [vmem:[%s2375_s21 + $0x40] sm:$0xff]  ;;  %1945 = vst [vmem:[%s2498_s10 + $0xc0] sm:$0xff] %v804_v11  ;;  %v914_v7 = vmul.f32 %v2393_v17, %v3056_v23  ;;  %v915_v18 = vmul.f32 %v2393_v17, %v847_v47  ;;  %v916_v10 = vmul.f32 %v2393_v17, %v3065_v53 }
  0x8e   : > { %1944 = vst [vmem:[%s2498_s10 + $0xb8] sm:$0x7f] %v803_v29  ;;  %v3822_v27 = vld [vmem:[#allocation9_spill] sm:$0xff]  ;;  %v876_v35 = vld [vmem:[%s2498_s10 + $0x11] sm:$0xff]  ;;  %v877_v36 = vld [vmem:[%s2498_s10 + $0x19] sm:$0x7f]  ;;  %v810_v49 = vadd.f32 %v780_v1, %v2920_v54  ;;  %v917_v42 = vmul.f32 %v2393_v17, %v849_v16  ;;  %v918_v47 = vmul.f32 %v2393_v17, %v3069_v55 }
  0x8f   : > { %v1074_v34 = vmul.f32 %v3822_v27, %v2872_v14  ;;  %v1075_v5 = vmul.f32 %v3822_v27, %v1007_v4  ;;  %v878_v57 = vld [vmem:[%s2498_s10 + $0x21] sm:$0xff]  ;;  %1946 = vst [vmem:[%s2498_s10 + $0xc8] sm:$0x7f] %v805_v24  ;;  %1947 = vst [vmem:[%s2498_s10 + $0xd0] sm:$0xff] %v806_v62  ;;  %v781_v14 = vmul.f32 %v3821_v46, %v717_v25  ;;  %v879_v44 = vld [vmem:[%s2498_s10 + $0x29] sm:$0x7f] }
  0x90   : > { %v851_v59 = vld [vmem:[%s2375_s21 + $0x48] sm:$0x7f]  ;;  %1948 = vst [vmem:[%s2498_s10 + $0xd8] sm:$0x7f] %v807_v48  ;;  %1949 = vst [vmem:[%s2498_s10 + $0xe0] sm:$0xff] %v808_v13  ;;  %v3095_v33 = vld [vmem:[%s2375_s21 + $0x50] sm:$0xff]  ;;  %v944_v26 = vadd.f32 %v912_v22, %v876_v35  ;;  %v945_v28 = vadd.f32 %v913_v6, %v877_v36  ;;  %v946_v9 = vadd.f32 %v914_v7, %v878_v57 }
  0x91   : > { %v853_v8 = vld [vmem:[%s2375_s21 + $0x58] sm:$0x7f]  ;;  %1950 = vst [vmem:[%s2498_s10 + $0xe8] sm:$0x7f] %v809_v20  ;;  %v1106_v4 = vadd.f32 %v1074_v34, %v1038_v60  ;;  %v1107_v46 = vadd.f32 %v1075_v5, %v1039_v37  ;;  %v3103_v40 = vld [vmem:[%s2375_s21 + $0x60] sm:$0xff]  ;;  %v811_v19 = vadd.f32 %v1922_v15, %v781_v14  ;;  %v3110_v25 = vld [vmem:[%s2375_s21 + $0x70] sm:$0xff]  ;;  %v947_v11 = vadd.f32 %v915_v18, %v879_v44 }
  0x92   : > { %v880_v21 = vld [vmem:[%s2498_s10 + $0x31] sm:$0xff]  ;;  %v855_v38 = vld [vmem:[%s2375_s21 + $0x68] sm:$0x7f]  ;;  %v881_v12 = vld [vmem:[%s2498_s10 + $0x39] sm:$0x7f]  ;;  %1951 = vst [vmem:[%s2498_s10 + $0xf0] sm:$0xff] %v810_v49  ;;  %v919_v60 = vmul.f32 %v2393_v17, %v851_v59  ;;  %v920_v37 = vmul.f32 %v2393_v17, %v3095_v33  ;;  %v921_v15 = vmul.f32 %v2393_v17, %v853_v8  ;;  %v922_v16 = vmul.f32 %v2393_v17, %v3103_v40 }
  0x93   : > { %v882_v2 = vld [vmem:[%s2498_s10 + $0x41] sm:$0xff]  ;;  %v883_v54 = vld [vmem:[%s2498_s10 + $0x49] sm:$0x7f]  ;;  %v857_v3 = vld [vmem:[%s2375_s21 + $0x78] sm:$0x7f]  ;;  %1138 = vst [vmem:[%s2498_s10] sm:$0xff] %v1106_v4  ;;  %v948_v1 = vadd.f32 %v916_v10, %v880_v21  ;;  %v949_v35 = vadd.f32 %v917_v42, %v881_v12  ;;  %v923_v57 = vmul.f32 %v2393_v17, %v855_v38 }
  0x94   : > { %v3114_v29 = vld [vmem:[%s2375_s21 + $0x80] sm:$0xff]  ;;  %1139 = vst [vmem:[%s2498_s10 + $0x8] sm:$0x7f] %v1107_v46  ;;  %v884_v24 = vld [vmem:[%s2498_s10 + $0x51] sm:$0xff]  ;;  %v885_v62 = vld [vmem:[%s2498_s10 + $0x59] sm:$0x7f]  ;;  %v950_v36 = vadd.f32 %v918_v47, %v882_v2  ;;  %v951_v6 = vadd.f32 %v919_v60, %v883_v54 }
  0x95   : > { %v886_v48 = vld [vmem:[%s2498_s10 + $0x61] sm:$0xff]  ;;  %1952 = vst [vmem:[%s2498_s10 + $0xf8] sm:$0x7f] %v811_v19  ;;  %976 = vst [vmem:[%s2498_s10 + $0x11] sm:$0xff] %v944_v26  ;;  %v887_v20 = vld [vmem:[%s2498_s10 + $0x69] sm:$0x7f]  ;;  %v952_v7 = vadd.f32 %v920_v37, %v884_v24  ;;  %v953_v44 = vadd.f32 %v921_v15, %v885_v62  ;;  %v924_v26 = vmul.f32 %v2393_v17, %v3110_v25 }
  0x96   : > { %v859_v13 = vld [vmem:[%s2375_s21 + $0x88] sm:$0x7f]  ;;  %977 = vst [vmem:[%s2498_s10 + $0x19] sm:$0x7f] %v945_v28  ;;  %978 = vst [vmem:[%s2498_s10 + $0x21] sm:$0xff] %v946_v9  ;;  %v3140_v34 = vld [vmem:[%s2375_s21 + $0x90] sm:$0xff]  ;;  %v954_v8 = vadd.f32 %v922_v16, %v886_v48  ;;  %v955_v19 = vadd.f32 %v923_v57, %v887_v20  ;;  %v925_v28 = vmul.f32 %v2393_v17, %v857_v3 }
  0x97   : > { %v861_v5 = vld [vmem:[%s2375_s21 + $0x98] sm:$0x7f]  ;;  %979 = vst [vmem:[%s2498_s10 + $0x29] sm:$0x7f] %v947_v11  ;;  %v3147_v14 = vld [vmem:[%s2375_s21 + $0xa0] sm:$0xff]  ;;  %v3154_v18 = vld [vmem:[%s2375_s21 + $0xb0] sm:$0xff]  ;;  %v926_v9 = vmul.f32 %v2393_v17, %v3114_v29  ;;  %v927_v10 = vmul.f32 %v2393_v17, %v859_v13  ;;  %v928_v3 = vmul.f32 %v2393_v17, %v3140_v34 }
  0x98   : > { %v888_v59 = vld [vmem:[%s2498_s10 + $0x71] sm:$0xff]  ;;  %v863_v22 = vld [vmem:[%s2375_s21 + $0xa8] sm:$0x7f]  ;;  %v889_v4 = vld [vmem:[%s2498_s10 + $0x79] sm:$0x7f]  ;;  %980 = vst [vmem:[%s2498_s10 + $0x31] sm:$0xff] %v948_v1  ;;  %v929_v42 = vmul.f32 %v2393_v17, %v861_v5  ;;  %v930_v47 = vmul.f32 %v2393_v17, %v3147_v14 }
  0x99   : > { %v890_v46 = vld [vmem:[%s2498_s10 + $0x81] sm:$0xff]  ;;  %v891_v49 = vld [vmem:[%s2498_s10 + $0x89] sm:$0x7f]  ;;  %v865_v21 = vld [vmem:[%s2375_s21 + $0xb8] sm:$0x7f]  ;;  %982 = vst [vmem:[%s2498_s10 + $0x41] sm:$0xff] %v950_v36  ;;  %v956_v60 = vadd.f32 %v924_v26, %v888_v59  ;;  %v957_v13 = vadd.f32 %v925_v28, %v889_v4  ;;  %v931_v15 = vmul.f32 %v2393_v17, %v863_v22 }
  0x9a   : > { %v3158_v38 = vld [vmem:[%s2375_s21 + $0xc0] sm:$0xff]  ;;  %981 = vst [vmem:[%s2498_s10 + $0x39] sm:$0x7f] %v949_v35  ;;  %v892_v12 = vld [vmem:[%s2498_s10 + $0x91] sm:$0xff]  ;;  %v893_v2 = vld [vmem:[%s2498_s10 + $0x99] sm:$0x7f]  ;;  %v958_v37 = vadd.f32 %v926_v9, %v890_v46  ;;  %v959_v1 = vadd.f32 %v927_v10, %v891_v49 }
  0x9b   : > { %v894_v54 = vld [vmem:[%s2498_s10 + $0xa1] sm:$0xff]  ;;  %983 = vst [vmem:[%s2498_s10 + $0x49] sm:$0x7f] %v951_v6  ;;  %984 = vst [vmem:[%s2498_s10 + $0x51] sm:$0xff] %v952_v7  ;;  %v895_v24 = vld [vmem:[%s2498_s10 + $0xa9] sm:$0x7f]  ;;  %v960_v35 = vadd.f32 %v928_v3, %v892_v12  ;;  %v961_v36 = vadd.f32 %v929_v42, %v893_v2  ;;  %v934_v4 = vmul.f32 %v2393_v17, %v3158_v38 }
  0x9c   : > { %v867_v11 = vld [vmem:[%s2375_s21 + $0xc8] sm:$0x7f]  ;;  %985 = vst [vmem:[%s2498_s10 + $0x59] sm:$0x7f] %v953_v44  ;;  %986 = vst [vmem:[%s2498_s10 + $0x61] sm:$0xff] %v954_v8  ;;  %v3184_v62 = vld [vmem:[%s2375_s21 + $0xd0] sm:$0xff]  ;;  %v962_v57 = vadd.f32 %v930_v47, %v894_v54  ;;  %v963_v22 = vadd.f32 %v931_v15, %v895_v24  ;;  %v932_v44 = vmul.f32 %v2393_v17, %v3154_v18 }
  0x9d   : > { %v869_v48 = vld [vmem:[%s2375_s21 + $0xd8] sm:$0x7f]  ;;  %987 = vst [vmem:[%s2498_s10 + $0x69] sm:$0x7f] %v955_v19  ;;  %v3191_v20 = vld [vmem:[%s2375_s21 + $0xe0] sm:$0xff]  ;;  %988 = vst [vmem:[%s2498_s10 + $0x71] sm:$0xff] %v956_v60  ;;  %v933_v8 = vmul.f32 %v2393_v17, %v865_v21  ;;  %v935_v26 = vmul.f32 %v2393_v17, %v867_v11  ;;  %v936_v28 = vmul.f32 %v2393_v17, %v3184_v62 }
  0x9e   : > { %v896_v16 = vld [vmem:[%s2498_s10 + $0xb1] sm:$0xff]  ;;  %v871_v5 = vld [vmem:[%s2375_s21 + $0xe8] sm:$0x7f]  ;;  %v897_v59 = vld [vmem:[%s2498_s10 + $0xb9] sm:$0x7f]  ;;  %990 = vst [vmem:[%s2498_s10 + $0x81] sm:$0xff] %v958_v37  ;;  %v937_v21 = vmul.f32 %v2393_v17, %v869_v48  ;;  %v938_v9 = vmul.f32 %v2393_v17, %v3191_v20 }
  0x9f   : > { %v898_v6 = vld [vmem:[%s2498_s10 + $0xc1] sm:$0xff]  ;;  %v899_v7 = vld [vmem:[%s2498_s10 + $0xc9] sm:$0x7f]  ;;  %989 = vst [vmem:[%s2498_s10 + $0x79] sm:$0x7f] %v957_v13  ;;  %v900_v46 = vld [vmem:[%s2498_s10 + $0xd1] sm:$0xff]  ;;  %v964_v10 = vadd.f32 %v932_v44, %v896_v16  ;;  %v965_v11 = vadd.f32 %v933_v8, %v897_v59  ;;  %v939_v42 = vmul.f32 %v2393_v17, %v871_v5 }
  0xa0   : > { %v901_v49 = vld [vmem:[%s2498_s10 + $0xd9] sm:$0x7f]  ;;  %v902_v19 = vld [vmem:[%s2498_s10 + $0xe1] sm:$0xff]  ;;  %991 = vst [vmem:[%s2498_s10 + $0x89] sm:$0x7f] %v959_v1  ;;  %992 = vst [vmem:[%s2498_s10 + $0x91] sm:$0xff] %v960_v35  ;;  %v966_v3 = vadd.f32 %v934_v4, %v898_v6  ;;  %v967_v60 = vadd.f32 %v935_v26, %v899_v7  ;;  %v968_v13 = vadd.f32 %v936_v28, %v900_v46 }
  0xa1   : > { %993 = vst [vmem:[%s2498_s10 + $0x99] sm:$0x7f] %v961_v36  ;;  %994 = vst [vmem:[%s2498_s10 + $0xa1] sm:$0xff] %v962_v57  ;;  %v903_v12 = vld [vmem:[%s2498_s10 + $0xe9] sm:$0x7f]  ;;  %v3220_v2 = vld [vmem:[%s2375_s21 + $0xf0] sm:$0xff]  ;;  %v969_v37 = vadd.f32 %v937_v21, %v901_v49  ;;  %v970_v15 = vadd.f32 %v938_v9, %v902_v19  ;;  %v1076_v6 = vmul.f32 %v3822_v27, %v2883_v51 }
  0xa2   : > { %v1009_v54 = vld [vmem:[%s2375_s21 + $0x19] sm:$0x7f]  ;;  %995 = vst [vmem:[%s2498_s10 + $0xa9] sm:$0x7f] %v963_v22  ;;  %v1201_v47 = vld [vmem:[%s2498_s10 + $0x1] sm:$0xff]  ;;  %v904_v1 = vld [vmem:[%s2498_s10 + $0xf1] sm:$0xff]  ;;  %v971_v5 = vadd.f32 %v939_v42, %v903_v12  ;;  %v940_v59 = vmul.f32 %v2393_v17, %v3220_v2  ;;  %v1078_v4 = vmul.f32 %v3822_v27, %v2894_v52  ;;  %v1080_v51 = vmul.f32 %v3822_v27, %v2916_v43 }
  0xa3   : > { %v1011_v24 = vld [vmem:[%s2375_s21 + $0x29] sm:$0x7f]  ;;  %v1013_v48 = vld [vmem:[%s2375_s21 + $0x39] sm:$0x7f]  ;;  %v1040_v16 = vld [vmem:[%s2498_s10 + $0x10] sm:$0xff]  ;;  %996 = vst [vmem:[%s2498_s10 + $0xb1] sm:$0xff] %v964_v10  ;;  %v1077_v8 = vmul.f32 %v3822_v27, %v1009_v54 }
  0xa4   : > { %v1041_v35 = vld [vmem:[%s2498_s10 + $0x18] sm:$0x7f]  ;;  %997 = vst [vmem:[%s2498_s10 + $0xb9] sm:$0x7f] %v965_v11  ;;  %998 = vst [vmem:[%s2498_s10 + $0xc1] sm:$0xff] %v966_v3  ;;  %v3823_v36 = vld [vmem:[#allocation10_spill] sm:$0xff]  ;;  %v1079_v46 = vmul.f32 %v3822_v27, %v1011_v24  ;;  %v972_v21 = vadd.f32 %v940_v59, %v904_v1  ;;  %v1108_v9 = vadd.f32 %v1076_v6, %v1040_v16 }
  0xa5   : > { %v1235_v57 = vmul.f32 %v3823_v36, %v3048_v31  ;;  %v1042_v7 = vld [vmem:[%s2498_s10 + $0x20] sm:$0xff]  ;;  %v1043_v22 = vld [vmem:[%s2498_s10 + $0x28] sm:$0x7f]  ;;  %v1044_v44 = vld [vmem:[%s2498_s10 + $0x30] sm:$0xff]  ;;  %999 = vst [vmem:[%s2498_s10 + $0xc9] sm:$0x7f] %v967_v60  ;;  %v1081_v52 = vmul.f32 %v3822_v27, %v1013_v48  ;;  %v1109_v43 = vadd.f32 %v1077_v8, %v1041_v35 }
  0xa6   : > { %1000 = vst [vmem:[%s2498_s10 + $0xd1] sm:$0xff] %v968_v13  ;;  %1001 = vst [vmem:[%s2498_s10 + $0xd9] sm:$0x7f] %v969_v37  ;;  %v1045_v49 = vld [vmem:[%s2498_s10 + $0x38] sm:$0x7f]  ;;  %v1046_v12 = vld [vmem:[%s2498_s10 + $0x40] sm:$0xff]  ;;  %v1110_v11 = vadd.f32 %v1078_v4, %v1042_v7  ;;  %v1111_v3 = vadd.f32 %v1079_v46, %v1043_v22  ;;  %v1112_v42 = vadd.f32 %v1080_v51, %v1044_v44 }
  0xa7   : > { %1002 = vst [vmem:[%s2498_s10 + $0xe1] sm:$0xff] %v970_v15  ;;  %v1015_v19 = vld [vmem:[%s2375_s21 + $0x49] sm:$0x7f]  ;;  %v1017_v26 = vld [vmem:[%s2375_s21 + $0x59] sm:$0x7f]  ;;  %v1265_v28 = vadd.f32 %v1235_v57, %v1201_v47  ;;  %v1048_v47 = vld [vmem:[%s2498_s10 + $0x50] sm:$0xff]  ;;  %v1113_v48 = vadd.f32 %v1081_v52, %v1045_v49  ;;  %v1082_v13 = vmul.f32 %v3822_v27, %v2924_v0  ;;  %v1084_v15 = vmul.f32 %v3822_v27, %v2928_v45 }
  0xa8   : > { %1003 = vst [vmem:[%s2498_s10 + $0xe9] sm:$0x7f] %v971_v5  ;;  %v1019_v54 = vld [vmem:[%s2375_s21 + $0x69] sm:$0x7f]  ;;  %v1021_v10 = vld [vmem:[%s2375_s21 + $0x79] sm:$0x7f]  ;;  %v1083_v37 = vmul.f32 %v3822_v27, %v1015_v19  ;;  %v1085_v5 = vmul.f32 %v3822_v27, %v1017_v26  ;;  %v1086_v0 = vmul.f32 %v3822_v27, %v2935_v32  ;;  %v1088_v45 = vmul.f32 %v3822_v27, %v2959_v50 }
  0xa9   : > { %v1047_v24 = vld [vmem:[%s2498_s10 + $0x48] sm:$0x7f]  ;;  %v1049_v60 = vld [vmem:[%s2498_s10 + $0x58] sm:$0x7f]  ;;  %1295 = vst [vmem:[%s2498_s10 + $0x1] sm:$0xff] %v1265_v28  ;;  %1004 = vst [vmem:[%s2498_s10 + $0xf1] sm:$0xff] %v972_v21  ;;  %v1087_v57 = vmul.f32 %v3822_v27, %v1019_v54  ;;  %v1114_v22 = vadd.f32 %v1082_v13, %v1046_v12  ;;  %v1116_v8 = vadd.f32 %v1084_v15, %v1048_v47 }
  0xaa   : > { %1140 = vst [vmem:[%s2498_s10 + $0x10] sm:$0xff] %v1108_v9  ;;  %v1050_v1 = vld [vmem:[%s2498_s10 + $0x60] sm:$0xff]  ;;  %v1051_v16 = vld [vmem:[%s2498_s10 + $0x68] sm:$0x7f]  ;;  %v1052_v35 = vld [vmem:[%s2498_s10 + $0x70] sm:$0xff]  ;;  %v1115_v44 = vadd.f32 %v1083_v37, %v1047_v24  ;;  %v1089_v32 = vmul.f32 %v3822_v27, %v1021_v10  ;;  %v1117_v50 = vadd.f32 %v1085_v5, %v1049_v60  ;;  %v1090_v12 = vmul.f32 %v3822_v27, %v2967_v30 }
  0xab   : > { %1141 = vst [vmem:[%s2498_s10 + $0x18] sm:$0x7f] %v1109_v43  ;;  %1142 = vst [vmem:[%s2498_s10 + $0x20] sm:$0xff] %v1110_v11  ;;  %v1053_v59 = vld [vmem:[%s2498_s10 + $0x78] sm:$0x7f]  ;;  %v1054_v4 = vld [vmem:[%s2498_s10 + $0x80] sm:$0xff]  ;;  %v1118_v49 = vadd.f32 %v1086_v0, %v1050_v1  ;;  %v1119_v19 = vadd.f32 %v1087_v57, %v1051_v16  ;;  %v1120_v26 = vadd.f32 %v1088_v45, %v1052_v35 }
  0xac   : > { %1143 = vst [vmem:[%s2498_s10 + $0x28] sm:$0x7f] %v1111_v3  ;;  %1144 = vst [vmem:[%s2498_s10 + $0x30] sm:$0xff] %v1112_v42  ;;  %v1023_v6 = vld [vmem:[%s2375_s21 + $0x89] sm:$0x7f]  ;;  %v1056_v21 = vld [vmem:[%s2498_s10 + $0x90] sm:$0xff]  ;;  %v1121_v52 = vadd.f32 %v1089_v32, %v1053_v59  ;;  %v1092_v10 = vmul.f32 %v3822_v27, %v2971_v41  ;;  %v1094_v30 = vmul.f32 %v3822_v27, %v2978_v39 }
  0xad   : > { %v1025_v7 = vld [vmem:[%s2375_s21 + $0x99] sm:$0x7f]  ;;  %1145 = vst [vmem:[%s2498_s10 + $0x38] sm:$0x7f] %v1113_v48  ;;  %v1027_v46 = vld [vmem:[%s2375_s21 + $0xa9] sm:$0x7f]  ;;  %v1091_v54 = vmul.f32 %v3822_v27, %v1023_v6  ;;  %v1096_v41 = vmul.f32 %v3822_v27, %v3003_v56  ;;  %v1122_v13 = vadd.f32 %v1090_v12, %v1054_v4  ;;  %v1100_v32 = vmul.f32 %v3822_v27, %v3015_v61 }
  0xae   : > { %v1029_v51 = vld [vmem:[%s2375_s21 + $0xb9] sm:$0x7f]  ;;  %v1055_v28 = vld [vmem:[%s2498_s10 + $0x88] sm:$0x7f]  ;;  %1146 = vst [vmem:[%s2498_s10 + $0x40] sm:$0xff] %v1114_v22  ;;  %1148 = vst [vmem:[%s2498_s10 + $0x50] sm:$0xff] %v1116_v8  ;;  %v1093_v42 = vmul.f32 %v3822_v27, %v1025_v7  ;;  %v1095_v24 = vmul.f32 %v3822_v27, %v1027_v46  ;;  %v1124_v15 = vadd.f32 %v1092_v10, %v1056_v21 }
  0xaf   : > { %v1057_v9 = vld [vmem:[%s2498_s10 + $0x98] sm:$0x7f]  ;;  %1147 = vst [vmem:[%s2498_s10 + $0x48] sm:$0x7f] %v1115_v44  ;;  %v1058_v43 = vld [vmem:[%s2498_s10 + $0xa0] sm:$0xff]  ;;  %v1060_v3 = vld [vmem:[%s2498_s10 + $0xb0] sm:$0xff]  ;;  %v1123_v37 = vadd.f32 %v1091_v54, %v1055_v28  ;;  %v1097_v39 = vmul.f32 %v3822_v27, %v1029_v51  ;;  %v1098_v44 = vmul.f32 %v3822_v27, %v3011_v58  ;;  %v1102_v58 = vmul.f32 %v3822_v27, %v3033_v63 }
  0xb0   : > { %v1059_v11 = vld [vmem:[%s2498_s10 + $0xa8] sm:$0x7f]  ;;  %1149 = vst [vmem:[%s2498_s10 + $0x58] sm:$0x7f] %v1117_v50  ;;  %1150 = vst [vmem:[%s2498_s10 + $0x60] sm:$0xff] %v1118_v49  ;;  %v1125_v56 = vadd.f32 %v1093_v42, %v1057_v9  ;;  %v1126_v5 = vadd.f32 %v1094_v30, %v1058_v43  ;;  %v1128_v57 = vadd.f32 %v1096_v41, %v1060_v3  ;;  %v1062_v45 = vld [vmem:[%s2498_s10 + $0xc0] sm:$0xff] }
  0xb1   : > { %1151 = vst [vmem:[%s2498_s10 + $0x68] sm:$0x7f] %v1119_v19  ;;  %1152 = vst [vmem:[%s2498_s10 + $0x70] sm:$0xff] %v1120_v26  ;;  %v1061_v47 = vld [vmem:[%s2498_s10 + $0xb8] sm:$0x7f]  ;;  %v1127_v0 = vadd.f32 %v1095_v24, %v1059_v11  ;;  %v1064_v6 = vld [vmem:[%s2498_s10 + $0xd0] sm:$0xff]  ;;  %v1130_v21 = vadd.f32 %v1098_v44, %v1062_v45 }
  0xb2   : > { %v1031_v60 = vld [vmem:[%s2375_s21 + $0xc9] sm:$0x7f]  ;;  %v1033_v48 = vld [vmem:[%s2375_s21 + $0xd9] sm:$0x7f]  ;;  %1153 = vst [vmem:[%s2498_s10 + $0x78] sm:$0x7f] %v1121_v52  ;;  %v1129_v22 = vadd.f32 %v1097_v39, %v1061_v47  ;;  %v1132_v52 = vadd.f32 %v1100_v32, %v1064_v6 }
  0xb3   : > { %v1035_v1 = vld [vmem:[%s2375_s21 + $0xe9] sm:$0x7f]  ;;  %v1954_v16 = vld [vmem:[%s2375_s21 + $0x18] sm:$0x7f]  ;;  %1154 = vst [vmem:[%s2498_s10 + $0x80] sm:$0xff] %v1122_v13  ;;  %1156 = vst [vmem:[%s2498_s10 + $0x90] sm:$0xff] %v1124_v15  ;;  %v1099_v8 = vmul.f32 %v3822_v27, %v1031_v60  ;;  %v1101_v50 = vmul.f32 %v3822_v27, %v1033_v48  ;;  %v1237_v13 = vmul.f32 %v3823_v36, %v3056_v23 }
  0xb4   : > { %v1202_v35 = vld [vmem:[%s2498_s10 + $0x9] sm:$0x7f]  ;;  %v873_v7 = vld [vmem:[%s2375_s21 + $0xf8] sm:$0x7f]  ;;  %1155 = vst [vmem:[%s2498_s10 + $0x88] sm:$0x7f] %v1123_v37  ;;  %v1103_v49 = vmul.f32 %v3822_v27, %v1035_v1  ;;  %v1236_v19 = vmul.f32 %v1954_v16, %v3823_v36 }
  0xb5   : > { %v1063_v59 = vld [vmem:[%s2498_s10 + $0xc8] sm:$0x7f]  ;;  %v1065_v4 = vld [vmem:[%s2498_s10 + $0xd8] sm:$0x7f]  ;;  %v1066_v46 = vld [vmem:[%s2498_s10 + $0xe0] sm:$0xff]  ;;  %1158 = vst [vmem:[%s2498_s10 + $0xa0] sm:$0xff] %v1126_v5  ;;  %v941_v60 = vmul.f32 %v2393_v17, %v873_v7  ;;  %v1239_v17 = vmul.f32 %v3823_v36, %v3065_v53 }
  0xb6   : > { %v1067_v51 = vld [vmem:[%s2498_s10 + $0xe8] sm:$0x7f]  ;;  %1157 = vst [vmem:[%s2498_s10 + $0x98] sm:$0x7f] %v1125_v56  ;;  %1159 = vst [vmem:[%s2498_s10 + $0xa8] sm:$0x7f] %v1127_v0  ;;  %v1131_v9 = vadd.f32 %v1099_v8, %v1063_v59  ;;  %v1133_v11 = vadd.f32 %v1101_v50, %v1065_v4  ;;  %v1134_v3 = vadd.f32 %v1102_v58, %v1066_v46 }
  0xb7   : > { %1160 = vst [vmem:[%s2498_s10 + $0xb0] sm:$0xff] %v1128_v57  ;;  %v1355_v61 = vld [vmem:[%s2498_s10] sm:$0xff]  ;;  %v905_v26 = vld [vmem:[%s2498_s10 + $0xf9] sm:$0x7f]  ;;  %v3352_v28 = vld [vmem:[%s2375_s21 + $0xf1] sm:$0xff]  ;;  %v1135_v42 = vadd.f32 %v1103_v49, %v1067_v51  ;;  %v1266_v30 = vadd.f32 %v1236_v19, %v1202_v35  ;;  %v1241_v35 = vmul.f32 %v3823_v36, %v3069_v55  ;;  %v1243_v19 = vmul.f32 %v3823_v36, %v3095_v33 }
  0xb8   : > { %1161 = vst [vmem:[%s2498_s10 + $0xb8] sm:$0x7f] %v1129_v22  ;;  %v3824_v63 = vld [vmem:[#allocation11_spill] sm:$0xff]  ;;  %v1956_v54 = vld [vmem:[%s2375_s21 + $0x28] sm:$0x7f]  ;;  %v1068_v24 = vld [vmem:[%s2498_s10 + $0xf0] sm:$0xff]  ;;  %v1104_v48 = vmul.f32 %v3822_v27, %v3352_v28  ;;  %v973_v57 = vadd.f32 %v941_v60, %v905_v26  ;;  %v1245_v26 = vmul.f32 %v3823_v36, %v3103_v40 }
  0xb9   : > { %v1389_v12 = vmul.f32 %v3824_v63, %v3048_v31  ;;  %v1958_v10 = vld [vmem:[%s2375_s21 + $0x38] sm:$0x7f]  ;;  %v1960_v43 = vld [vmem:[%s2375_s21 + $0x48] sm:$0x7f]  ;;  %1162 = vst [vmem:[%s2498_s10 + $0xc0] sm:$0xff] %v1130_v21  ;;  %1164 = vst [vmem:[%s2498_s10 + $0xd0] sm:$0xff] %v1132_v52  ;;  %v1238_v1 = vmul.f32 %v1956_v54, %v3823_v36  ;;  %v1247_v54 = vmul.f32 %v3823_v36, %v3110_v25 }
  0xba   : > { %v1203_v41 = vld [vmem:[%s2498_s10 + $0x11] sm:$0xff]  ;;  %v1204_v47 = vld [vmem:[%s2498_s10 + $0x19] sm:$0x7f]  ;;  %1163 = vst [vmem:[%s2498_s10 + $0xc8] sm:$0x7f] %v1131_v9  ;;  %v1205_v37 = vld [vmem:[%s2498_s10 + $0x21] sm:$0xff]  ;;  %v1240_v16 = vmul.f32 %v1958_v10, %v3823_v36  ;;  %v1136_v45 = vadd.f32 %v1104_v48, %v1068_v24  ;;  %v1242_v6 = vmul.f32 %v1960_v43, %v3823_v36  ;;  %v1249_v43 = vmul.f32 %v3823_v36, %v3114_v29 }
  0xbb   : > { %v3366_v31 = vadd.f32 %v1389_v12, %v1355_v61  ;;  %v1206_v15 = vld [vmem:[%s2498_s10 + $0x29] sm:$0x7f]  ;;  %v1207_v39 = vld [vmem:[%s2498_s10 + $0x31] sm:$0xff]  ;;  %1165 = vst [vmem:[%s2498_s10 + $0xd8] sm:$0x7f] %v1133_v11  ;;  %1166 = vst [vmem:[%s2498_s10 + $0xe0] sm:$0xff] %v1134_v3  ;;  %v1267_v59 = vadd.f32 %v1237_v13, %v1203_v41  ;;  %v1268_v8 = vadd.f32 %v1238_v1, %v1204_v47 }
  0xbc   : > { %1167 = vst [vmem:[%s2498_s10 + $0xe8] sm:$0x7f] %v1135_v42  ;;  %1296 = vst [vmem:[%s2498_s10 + $0x9] sm:$0x7f] %v1266_v30  ;;  %v1208_v56 = vld [vmem:[%s2498_s10 + $0x39] sm:$0x7f]  ;;  %v1269_v32 = vadd.f32 %v1239_v17, %v1205_v37  ;;  %v1270_v4 = vadd.f32 %v1240_v16, %v1206_v15  ;;  %v1271_v46 = vadd.f32 %v1241_v35, %v1207_v39 }
  0xbd   : > { %v1962_v5 = vld [vmem:[%s2375_s21 + $0x58] sm:$0x7f]  ;;  %v1964_v0 = vld [vmem:[%s2375_s21 + $0x68] sm:$0x7f]  ;;  %1005 = vst [vmem:[%s2498_s10 + $0xf9] sm:$0x7f] %v973_v57  ;;  %v1272_v49 = vadd.f32 %v1242_v6, %v1208_v56 }
  0xbe   : > { %v1209_v7 = vld [vmem:[%s2498_s10 + $0x41] sm:$0xff]  ;;  %v1966_v22 = vld [vmem:[%s2375_s21 + $0x78] sm:$0x7f]  ;;  %v1210_v51 = vld [vmem:[%s2498_s10 + $0x49] sm:$0x7f]  ;;  %1168 = vst [vmem:[%s2498_s10 + $0xf0] sm:$0xff] %v1136_v45  ;;  %v1244_v61 = vmul.f32 %v1962_v5, %v3823_v36  ;;  %v1246_v12 = vmul.f32 %v1964_v0, %v3823_v36  ;;  %v1251_v0 = vmul.f32 %v3823_v36, %v3140_v34  ;;  %v1253_v45 = vmul.f32 %v3823_v36, %v3147_v14 }
  0xbf   : > { %v1968_v44 = vld [vmem:[%s2375_s21 + $0x88] sm:$0x7f]  ;;  %v1211_v50 = vld [vmem:[%s2498_s10 + $0x51] sm:$0xff]  ;;  %v1212_v58 = vld [vmem:[%s2498_s10 + $0x59] sm:$0x7f]  ;;  %1297 = vst [vmem:[%s2498_s10 + $0x11] sm:$0xff] %v1267_v59  ;;  %v1248_v10 = vmul.f32 %v1966_v22, %v3823_v36  ;;  %v1273_v30 = vadd.f32 %v1243_v19, %v1209_v7 }
  0xc0   : > { %v1213_v21 = vld [vmem:[%s2498_s10 + $0x61] sm:$0xff]  ;;  %v1214_v9 = vld [vmem:[%s2498_s10 + $0x69] sm:$0x7f]  ;;  %v1215_v52 = vld [vmem:[%s2498_s10 + $0x71] sm:$0xff]  ;;  %1298 = vst [vmem:[%s2498_s10 + $0x19] sm:$0x7f] %v1268_v8  ;;  %v1274_v24 = vadd.f32 %v1244_v61, %v1210_v51  ;;  %v1275_v41 = vadd.f32 %v1245_v26, %v1211_v50  ;;  %v1250_v47 = vmul.f32 %v1968_v44, %v3823_v36  ;;  %v1276_v37 = vadd.f32 %v1246_v12, %v1212_v58 }
  0xc1   : > { %1299 = vst [vmem:[%s2498_s10 + $0x21] sm:$0xff] %v1269_v32  ;;  %1300 = vst [vmem:[%s2498_s10 + $0x29] sm:$0x7f] %v1270_v4  ;;  %v1216_v11 = vld [vmem:[%s2498_s10 + $0x79] sm:$0x7f]  ;;  %v1217_v60 = vld [vmem:[%s2498_s10 + $0x81] sm:$0xff]  ;;  %v1277_v15 = vadd.f32 %v1247_v54, %v1213_v21  ;;  %v1278_v39 = vadd.f32 %v1248_v10, %v1214_v9  ;;  %v1279_v1 = vadd.f32 %v1249_v43, %v1215_v52 }
  0xc2   : > { %1301 = vst [vmem:[%s2498_s10 + $0x31] sm:$0xff] %v1271_v46  ;;  %v1970_v3 = vld [vmem:[%s2375_s21 + $0x98] sm:$0x7f]  ;;  %v1972_v42 = vld [vmem:[%s2375_s21 + $0xa8] sm:$0x7f]  ;;  %1303 = vst [vmem:[%s2498_s10 + $0x41] sm:$0xff] %v1273_v30  ;;  %v1280_v5 = vadd.f32 %v1250_v47, %v1216_v11  ;;  %v1255_v8 = vmul.f32 %v3823_v36, %v3154_v18  ;;  %v1257_v4 = vmul.f32 %v3823_v36, %v3158_v38 }
  0xc3   : > { %1302 = vst [vmem:[%s2498_s10 + $0x39] sm:$0x7f] %v1272_v49  ;;  %v1974_v48 = vld [vmem:[%s2375_s21 + $0xb8] sm:$0x7f]  ;;  %v1976_v13 = vld [vmem:[%s2375_s21 + $0xc8] sm:$0x7f]  ;;  %v1252_v57 = vmul.f32 %v1970_v3, %v3823_v36  ;;  %v1254_v44 = vmul.f32 %v1972_v42, %v3823_v36  ;;  %v1281_v58 = vadd.f32 %v1251_v0, %v1217_v60  ;;  %v1259_v30 = vmul.f32 %v3823_v36, %v3184_v62 }
  0xc4   : > { %v1218_v17 = vld [vmem:[%s2498_s10 + $0x89] sm:$0x7f]  ;;  %v1219_v16 = vld [vmem:[%s2498_s10 + $0x91] sm:$0xff]  ;;  %v1220_v35 = vld [vmem:[%s2498_s10 + $0x99] sm:$0x7f]  ;;  %1305 = vst [vmem:[%s2498_s10 + $0x51] sm:$0xff] %v1275_v41  ;;  %v1256_v32 = vmul.f32 %v1974_v48, %v3823_v36  ;;  %v1258_v61 = vmul.f32 %v1976_v13, %v3823_v36  ;;  %v1261_v41 = vmul.f32 %v3823_v36, %v3191_v20 }
  0xc5   : > { %v1978_v56 = vld [vmem:[%s2375_s21 + $0xd8] sm:$0x7f]  ;;  %1304 = vst [vmem:[%s2498_s10 + $0x49] sm:$0x7f] %v1274_v24  ;;  %v1221_v59 = vld [vmem:[%s2498_s10 + $0xa1] sm:$0xff]  ;;  %1307 = vst [vmem:[%s2498_s10 + $0x61] sm:$0xff] %v1277_v15  ;;  %v1282_v49 = vadd.f32 %v1252_v57, %v1218_v17  ;;  %v1283_v19 = vadd.f32 %v1253_v45, %v1219_v16  ;;  %v1284_v52 = vadd.f32 %v1254_v44, %v1220_v35 }
  0xc6   : > { %v1222_v6 = vld [vmem:[%s2498_s10 + $0xa9] sm:$0x7f]  ;;  %v1223_v7 = vld [vmem:[%s2498_s10 + $0xb1] sm:$0xff]  ;;  %1306 = vst [vmem:[%s2498_s10 + $0x59] sm:$0x7f] %v1276_v37  ;;  %1309 = vst [vmem:[%s2498_s10 + $0x71] sm:$0xff] %v1279_v1  ;;  %v1285_v12 = vadd.f32 %v1255_v8, %v1221_v59  ;;  %v1260_v24 = vmul.f32 %v1978_v56, %v3823_v36  ;;  %v1263_v37 = vmul.f32 %v3823_v36, %v3220_v2 }
  0xc7   : > { %v1980_v22 = vld [vmem:[%s2375_s21 + $0xe8] sm:$0x7f]  ;;  %1308 = vst [vmem:[%s2498_s10 + $0x69] sm:$0x7f] %v1278_v39  ;;  %v1224_v46 = vld [vmem:[%s2498_s10 + $0xb9] sm:$0x7f]  ;;  %v1286_v54 = vadd.f32 %v1256_v32, %v1222_v6  ;;  %v1287_v10 = vadd.f32 %v1257_v4, %v1223_v7 }
  0xc8   : > { %v1982_v51 = vld [vmem:[%s2375_s21 + $0xf8] sm:$0x7f]  ;;  %1310 = vst [vmem:[%s2498_s10 + $0x79] sm:$0x7f] %v1280_v5  ;;  %v1225_v26 = vld [vmem:[%s2498_s10 + $0xc1] sm:$0xff]  ;;  %1311 = vst [vmem:[%s2498_s10 + $0x81] sm:$0xff] %v1281_v58  ;;  %v1288_v42 = vadd.f32 %v1258_v61, %v1224_v46  ;;  %v1262_v13 = vmul.f32 %v1980_v22, %v3823_v36  ;;  %v1391_v46 = vmul.f32 %v3824_v63, %v3056_v23 }
  0xc9   : > { %v1984_v50 = vld [vmem:[%s2375_s21 + $0x18] sm:$0xff]  ;;  %v3460_v21 = vld [vmem:[%s3800_s1 + $0x8] ss:$0 sm:$0xff]  ;;  %v1226_v43 = vld [vmem:[%s2498_s10 + $0xc9] sm:$0x7f]  ;;  %1313 = vst [vmem:[%s2498_s10 + $0x91] sm:$0xff] %v1283_v19  ;;  %v1264_v15 = vmul.f32 %v1982_v51, %v3823_v36  ;;  %v1289_v16 = vadd.f32 %v1259_v30, %v1225_v26  ;;  %v1395_v23 = vmul.f32 %v3824_v63, %v3069_v55 }
  0xca   : > { %v2013_v9 = vld [vmem:[%s2375_s21 + $0x11] sm:$0xff]  ;;  %v1228_v3 = vld [vmem:[%s2498_s10 + $0xd9] sm:$0x7f]  ;;  %1312 = vst [vmem:[%s2498_s10 + $0x89] sm:$0x7f] %v1282_v49  ;;  %v1229_v47 = vld [vmem:[%s2498_s10 + $0xe1] sm:$0xff]  ;;  %v1390_v39 = vmul.f32 %v1984_v50, %v3824_v63  ;;  %v1290_v35 = vadd.f32 %v1260_v24, %v1226_v43 }
  0xcb   : > { %v1227_v11 = vld [vmem:[%s2498_s10 + $0xd1] sm:$0xff]  ;;  %v1230_v60 = vld [vmem:[%s2498_s10 + $0xe9] sm:$0x7f]  ;;  %1314 = vst [vmem:[%s2498_s10 + $0x99] sm:$0x7f] %v1284_v52  ;;  %1315 = vst [vmem:[%s2498_s10 + $0xa1] sm:$0xff] %v1285_v12  ;;  %v1543_v5 = vmul.f32 %v3460_v21, %v2013_v9  ;;  %v1292_v45 = vadd.f32 %v1262_v13, %v1228_v3  ;;  %v1293_v59 = vadd.f32 %v1263_v37, %v1229_v47 }
  0xcc   : > { %v1356_v48 = vld [vmem:[%s2498_s10 + $0x8] sm:$0xff]  ;;  %1316 = vst [vmem:[%s2498_s10 + $0xa9] sm:$0x7f] %v1286_v54  ;;  %1317 = vst [vmem:[%s2498_s10 + $0xb1] sm:$0xff] %v1287_v10  ;;  %v1037_v1 = vld [vmem:[%s2375_s21 + $0xf9] sm:$0x7f]  ;;  %v1291_v56 = vadd.f32 %v1261_v41, %v1227_v11  ;;  %v1294_v6 = vadd.f32 %v1264_v15, %v1230_v60  ;;  %v1397_v54 = vmul.f32 %v3824_v63, %v3095_v33 }
  0xcd   : > { %v1986_v17 = vld [vmem:[%s2375_s21 + $0x28] sm:$0xff]  ;;  %1318 = vst [vmem:[%s2498_s10 + $0xb9] sm:$0x7f] %v1288_v42  ;;  %v1069_v0 = vld [vmem:[%s2498_s10 + $0xf8] sm:$0x7f]  ;;  %v1420_v7 = vadd.f32 %v1390_v39, %v1356_v48  ;;  %v1357_v22 = vld [vmem:[%s2498_s10 + $0x10] sm:$0xff]  ;;  %v1573_v32 = vadd.f32 %v1543_v5, %v3366_v31  ;;  %v1105_v4 = vmul.f32 %v3822_v27, %v1037_v1  ;;  %v1393_v27 = vmul.f32 %v3824_v63, %v3065_v53 }
  0xce   : > { %v1988_v57 = vld [vmem:[%s2375_s21 + $0x38] sm:$0xff]  ;;  %v1990_v36 = vld [vmem:[%s2375_s21 + $0x48] sm:$0xff]  ;;  %v1359_v8 = vld [vmem:[%s2498_s10 + $0x20] sm:$0xff]  ;;  %1319 = vst [vmem:[%s2498_s10 + $0xc1] sm:$0xff] %v1289_v16  ;;  %v1392_v51 = vmul.f32 %v1986_v17, %v3824_v63  ;;  %v3521_v12 = vadd.f32 %v1391_v46, %v1357_v22  ;;  %v1399_v48 = vmul.f32 %v3824_v63, %v3103_v40  ;;  %v1401_v1 = vmul.f32 %v3824_v63, %v3110_v25 }
  0xcf   : > { %v1358_v44 = vld [vmem:[%s2498_s10 + $0x18] sm:$0xff]  ;;  %1320 = vst [vmem:[%s2498_s10 + $0xc9] sm:$0x7f] %v1290_v35  ;;  %1321 = vst [vmem:[%s2498_s10 + $0xd1] sm:$0xff] %v1291_v56  ;;  %v1360_v50 = vld [vmem:[%s2498_s10 + $0x28] sm:$0xff]  ;;  %v1394_v31 = vmul.f32 %v1988_v57, %v3824_v63  ;;  %v1396_v19 = vmul.f32 %v1990_v36, %v3824_v63  ;;  %v1137_v52 = vadd.f32 %v1105_v4, %v1069_v0 }
  0xd0   : > { %v1361_v58 = vld [vmem:[%s2498_s10 + $0x30] sm:$0xff]  ;;  %v1362_v49 = vld [vmem:[%s2498_s10 + $0x38] sm:$0xff]  ;;  %1322 = vst [vmem:[%s2498_s10 + $0xd9] sm:$0x7f] %v1292_v45  ;;  %1323 = vst [vmem:[%s2498_s10 + $0xe1] sm:$0xff] %v1293_v59  ;;  %v1422_v53 = vadd.f32 %v1392_v51, %v1358_v44  ;;  %v3528_v11 = vadd.f32 %v1393_v27, %v1359_v8  ;;  %v1403_v16 = vmul.f32 %v3824_v63, %v3114_v29 }
  0xd1   : > { %1324 = vst [vmem:[%s2498_s10 + $0xe9] sm:$0x7f] %v1294_v6  ;;  %1450 = vst [vmem:[%s2498_s10 + $0x8] sm:$0xff] %v1420_v7  ;;  %v1363_v61 = vld [vmem:[%s2498_s10 + $0x40] sm:$0xff]  ;;  %v1992_v26 = vld [vmem:[%s2375_s21 + $0x58] sm:$0xff]  ;;  %v1424_v3 = vadd.f32 %v1394_v31, %v1360_v50  ;;  %v3530_v42 = vadd.f32 %v1395_v23, %v1361_v58  ;;  %v1426_v30 = vadd.f32 %v1396_v19, %v1362_v49 }
  0xd2   : > { %v1994_v9 = vld [vmem:[%s2375_s21 + $0x68] sm:$0xff]  ;;  %1603 = vst [vmem:[%s2498_s10] sm:$0xff] %v1573_v32  ;;  %v1996_v55 = vld [vmem:[%s2375_s21 + $0x78] sm:$0xff]  ;;  %v1365_v24 = vld [vmem:[%s2498_s10 + $0x50] sm:$0xff]  ;;  %v3537_v33 = vadd.f32 %v1397_v54, %v1363_v61  ;;  %v1398_v60 = vmul.f32 %v1992_v26, %v3824_v63  ;;  %v1405_v36 = vmul.f32 %v3824_v63, %v3140_v34  ;;  %v1407_v50 = vmul.f32 %v3824_v63, %v3147_v14 }
  0xd3   : > { %v1364_v10 = vld [vmem:[%s2498_s10 + $0x48] sm:$0xff]  ;;  %v1366_v41 = vld [vmem:[%s2498_s10 + $0x58] sm:$0xff]  ;;  %v1367_v47 = vld [vmem:[%s2498_s10 + $0x60] sm:$0xff]  ;;  %1169 = vst [vmem:[%s2498_s10 + $0xf8] sm:$0x7f] %v1137_v52  ;;  %v1400_v13 = vmul.f32 %v1994_v9, %v3824_v63  ;;  %v1402_v17 = vmul.f32 %v1996_v55, %v3824_v63  ;;  %v3557_v57 = vadd.f32 %v1399_v48, %v1365_v24  ;;  %v1409_v23 = vmul.f32 %v3824_v63, %v3154_v18 }
  0xd4   : > { %v1998_v43 = vld [vmem:[%s2375_s21 + $0x88] sm:$0xff]  ;;  %1452 = vst [vmem:[%s2498_s10 + $0x18] sm:$0xff] %v1422_v53  ;;  %v1369_v15 = vld [vmem:[%s2498_s10 + $0x70] sm:$0xff]  ;;  %v1370_v39 = vld [vmem:[%s2498_s10 + $0x78] sm:$0xff]  ;;  %v1428_v0 = vadd.f32 %v1398_v60, %v1364_v10  ;;  %v3564_v6 = vadd.f32 %v1401_v1, %v1367_v47  ;;  %v1411_v61 = vmul.f32 %v3824_v63, %v3158_v38  ;;  %v1413_v10 = vmul.f32 %v3824_v63, %v3184_v62 }
  0xd5   : > { %v1368_v37 = vld [vmem:[%s2498_s10 + $0x68] sm:$0xff]  ;;  %1454 = vst [vmem:[%s2498_s10 + $0x28] sm:$0xff] %v1424_v3  ;;  %1456 = vst [vmem:[%s2498_s10 + $0x38] sm:$0xff] %v1426_v30  ;;  %v1404_v40 = vmul.f32 %v1998_v43, %v3824_v63  ;;  %v1371_v35 = vld [vmem:[%s2498_s10 + $0x80] sm:$0xff]  ;;  %v1430_v25 = vadd.f32 %v1400_v13, %v1366_v41  ;;  %v3566_v22 = vadd.f32 %v1403_v16, %v1369_v15 }
  0xd6   : > { %v2000_v56 = vld [vmem:[%s2375_s21 + $0x98] sm:$0xff]  ;;  %v2002_v5 = vld [vmem:[%s2375_s21 + $0xa8] sm:$0xff]  ;;  %v1432_v7 = vadd.f32 %v1402_v17, %v1368_v37  ;;  %v1373_v8 = vld [vmem:[%s2498_s10 + $0x90] sm:$0xff]  ;;  %1458 = vst [vmem:[%s2498_s10 + $0x48] sm:$0xff] %v1428_v0  ;;  %v3574_v34 = vadd.f32 %v1405_v36, %v1371_v35  ;;  %v1417_v35 = vmul.f32 %v3824_v63, %v3220_v2 }
  0xd7   : > { %v1372_v45 = vld [vmem:[%s2498_s10 + $0x88] sm:$0xff]  ;;  %v2004_v29 = vld [vmem:[%s2375_s21 + $0xb8] sm:$0xff]  ;;  %v1434_v44 = vadd.f32 %v1404_v40, %v1370_v39  ;;  %v1375_v4 = vld [vmem:[%s2498_s10 + $0xa0] sm:$0xff]  ;;  %1460 = vst [vmem:[%s2498_s10 + $0x58] sm:$0xff] %v1430_v25  ;;  %v1406_v51 = vmul.f32 %v2000_v56, %v3824_v63  ;;  %v1408_v58 = vmul.f32 %v2002_v5, %v3824_v63  ;;  %v3594_v54 = vadd.f32 %v1407_v50, %v1373_v8 }
  0xd8   : > { %v2006_v59 = vld [vmem:[%s2375_s21 + $0xc8] sm:$0xff]  ;;  %v1374_v32 = vld [vmem:[%s2498_s10 + $0x98] sm:$0xff]  ;;  %v1377_v27 = vld [vmem:[%s2498_s10 + $0xb0] sm:$0xff]  ;;  %1462 = vst [vmem:[%s2498_s10 + $0x68] sm:$0xff] %v1432_v7  ;;  %v1410_v19 = vmul.f32 %v2004_v29, %v3824_v63  ;;  %v3601_v3 = vadd.f32 %v1409_v23, %v1375_v4  ;;  %v1415_v39 = vmul.f32 %v3824_v63, %v3191_v20 }
  0xd9   : > { %v2008_v46 = vld [vmem:[%s2375_s21 + $0xd8] sm:$0xff]  ;;  %v1376_v49 = vld [vmem:[%s2498_s10 + $0xa8] sm:$0xff]  ;;  %1464 = vst [vmem:[%s2498_s10 + $0x78] sm:$0xff] %v1434_v44  ;;  %v1412_v14 = vmul.f32 %v2006_v59, %v3824_v63  ;;  %v1379_v26 = vld [vmem:[%s2498_s10 + $0xc0] sm:$0xff]  ;;  %v1436_v53 = vadd.f32 %v1406_v51, %v1372_v45  ;;  %v1438_v18 = vadd.f32 %v1408_v58, %v1374_v32  ;;  %v3603_v24 = vadd.f32 %v1411_v61, %v1377_v27 }
  0xda   : > { %v1378_v31 = vld [vmem:[%s2498_s10 + $0xb8] sm:$0xff]  ;;  %v2010_v9 = vld [vmem:[%s2375_s21 + $0xe8] sm:$0xff]  ;;  %v1440_v30 = vadd.f32 %v1410_v19, %v1376_v49  ;;  %v1381_v60 = vld [vmem:[%s2498_s10 + $0xd0] sm:$0xff]  ;;  %v3612_v62 = vadd.f32 %v1413_v10, %v1379_v26  ;;  %v1414_v15 = vmul.f32 %v2008_v46, %v3824_v63 }
  0xdb   : > { %v2012_v52 = vld [vmem:[%s2375_s21 + $0xf8] sm:$0xff]  ;;  %v2015_v55 = vld [vmem:[%s2375_s21 + $0x21] sm:$0xff]  ;;  %v2016_v43 = vld [vmem:[%s2375_s21 + $0x29] sm:$0x7f]  ;;  %v1442_v41 = vadd.f32 %v1412_v14, %v1378_v31  ;;  %1466 = vst [vmem:[%s2498_s10 + $0x88] sm:$0xff] %v1436_v53  ;;  %v1416_v1 = vmul.f32 %v2010_v9, %v3824_v63  ;;  %v3631_v29 = vadd.f32 %v1415_v39, %v1381_v60 }
  0xdc   : > { %v2014_v38 = vld [vmem:[%s2375_s21 + $0x19] sm:$0x7f]  ;;  %v1380_v47 = vld [vmem:[%s2498_s10 + $0xc8] sm:$0xff]  ;;  %v2017_v13 = vld [vmem:[%s2375_s21 + $0x31] sm:$0xff]  ;;  %1468 = vst [vmem:[%s2498_s10 + $0x98] sm:$0xff] %v1438_v18  ;;  %v1418_v56 = vmul.f32 %v2012_v52, %v3824_v63  ;;  %v1545_v20 = vmul.f32 %v3460_v21, %v2015_v55  ;;  %v1546_v2 = vmul.f32 %v3460_v21, %v2016_v43 }
  0xdd   : > { %v1382_v48 = vld [vmem:[%s2498_s10 + $0xd8] sm:$0xff]  ;;  %v1383_v17 = vld [vmem:[%s2498_s10 + $0xe0] sm:$0xff]  ;;  %v1384_v16 = vld [vmem:[%s2498_s10 + $0xe8] sm:$0xff]  ;;  %1470 = vst [vmem:[%s2498_s10 + $0xa8] sm:$0xff] %v1440_v30  ;;  %v1544_v5 = vmul.f32 %v3460_v21, %v2014_v38  ;;  %v1444_v45 = vadd.f32 %v1414_v15, %v1380_v47  ;;  %v1547_v27 = vmul.f32 %v3460_v21, %v2017_v13 }
  0xde   : > { %v2018_v37 = vld [vmem:[%s2375_s21 + $0x39] sm:$0x7f]  ;;  %v1510_v40 = vld [vmem:[%s2498_s10 + $0x8] sm:$0x7f]  ;;  %1472 = vst [vmem:[%s2498_s10 + $0xb8] sm:$0xff] %v1442_v41  ;;  %v1446_v59 = vadd.f32 %v1416_v1, %v1382_v48  ;;  %v2021_v7 = vld [vmem:[%s2375_s21 + $0x51] sm:$0xff]  ;;  %v3637_v8 = vadd.f32 %v1417_v35, %v1383_v17  ;;  %v1448_v32 = vadd.f32 %v1418_v56, %v1384_v16  ;;  %v1575_v46 = vadd.f32 %v1545_v20, %v3521_v12 }
  0xdf   : > { %v1512_v0 = vld [vmem:[%s2498_s10 + $0x18] sm:$0x7f]  ;;  %v2019_v25 = vld [vmem:[%s2375_s21 + $0x41] sm:$0xff]  ;;  %v2020_v36 = vld [vmem:[%s2375_s21 + $0x49] sm:$0x7f]  ;;  %v1574_v4 = vadd.f32 %v1544_v5, %v1510_v40  ;;  %1474 = vst [vmem:[%s2498_s10 + $0xc8] sm:$0xff] %v1444_v45  ;;  %v1548_v31 = vmul.f32 %v3460_v21, %v2018_v37  ;;  %v1551_v26 = vmul.f32 %v3460_v21, %v2021_v7  ;;  %v1577_v38 = vadd.f32 %v1547_v27, %v3528_v11 }
  0xe0   : > { %v2022_v63 = vld [vmem:[%s2375_s21 + $0x59] sm:$0x7f]  ;;  %v2023_v44 = vld [vmem:[%s2375_s21 + $0x61] sm:$0xff]  ;;  %v2024_v50 = vld [vmem:[%s2375_s21 + $0x69] sm:$0x7f]  ;;  %1476 = vst [vmem:[%s2498_s10 + $0xd8] sm:$0xff] %v1446_v59  ;;  %v1576_v49 = vadd.f32 %v1546_v2, %v1512_v0  ;;  %v1549_v23 = vmul.f32 %v3460_v21, %v2019_v25  ;;  %v1550_v12 = vmul.f32 %v3460_v21, %v2020_v36 }
  0xe1   : > { %v1514_v51 = vld [vmem:[%s2498_s10 + $0x28] sm:$0x7f]  ;;  %v2025_v58 = vld [vmem:[%s2375_s21 + $0x71] sm:$0xff]  ;;  %v2026_v14 = vld [vmem:[%s2375_s21 + $0x79] sm:$0x7f]  ;;  %1478 = vst [vmem:[%s2498_s10 + $0xe8] sm:$0xff] %v1448_v32  ;;  %v1552_v9 = vmul.f32 %v3460_v21, %v2022_v63  ;;  %v1553_v52 = vmul.f32 %v3460_v21, %v2023_v44  ;;  %v1554_v30 = vmul.f32 %v3460_v21, %v2024_v50  ;;  %v1581_v13 = vadd.f32 %v1551_v26, %v3537_v33 }
  0xe2   : > { %v1516_v19 = vld [vmem:[%s2498_s10 + $0x38] sm:$0x7f]  ;;  %v1518_v61 = vld [vmem:[%s2498_s10 + $0x48] sm:$0x7f]  ;;  %1604 = vst [vmem:[%s2498_s10 + $0x8] sm:$0x7f] %v1574_v4  ;;  %v1578_v55 = vadd.f32 %v1548_v31, %v1514_v51  ;;  %v1579_v43 = vadd.f32 %v1549_v23, %v3530_v42  ;;  %v1555_v17 = vmul.f32 %v3460_v21, %v2025_v58  ;;  %v1556_v33 = vmul.f32 %v3460_v21, %v2026_v14 }
  0xe3   : > { %1605 = vst [vmem:[%s2498_s10 + $0x10] sm:$0xff] %v1575_v46  ;;  %v1520_v53 = vld [vmem:[%s2498_s10 + $0x58] sm:$0x7f]  ;;  %v2027_v18 = vld [vmem:[%s2375_s21 + $0x81] sm:$0xff]  ;;  %v2028_v10 = vld [vmem:[%s2375_s21 + $0x89] sm:$0x7f]  ;;  %v1580_v48 = vadd.f32 %v1550_v12, %v1516_v19  ;;  %v1582_v37 = vadd.f32 %v1552_v9, %v1518_v61  ;;  %v1583_v11 = vadd.f32 %v1553_v52, %v3557_v57 }
  0xe4   : > { %1606 = vst [vmem:[%s2498_s10 + $0x18] sm:$0x7f] %v1576_v49  ;;  %v2029_v41 = vld [vmem:[%s2375_s21 + $0x91] sm:$0xff]  ;;  %v2030_v47 = vld [vmem:[%s2375_s21 + $0x99] sm:$0x7f]  ;;  %v2031_v60 = vld [vmem:[%s2375_s21 + $0xa1] sm:$0xff]  ;;  %v1584_v1 = vadd.f32 %v1554_v30, %v1520_v53  ;;  %v1557_v16 = vmul.f32 %v3460_v21, %v2027_v18  ;;  %v1558_v56 = vmul.f32 %v3460_v21, %v2028_v10  ;;  %v1585_v59 = vadd.f32 %v1555_v17, %v3564_v6 }
  0xe5   : > { %v1522_v15 = vld [vmem:[%s2498_s10 + $0x68] sm:$0x7f]  ;;  %v2033_v39 = vld [vmem:[%s2375_s21 + $0xb1] sm:$0xff]  ;;  %1607 = vst [vmem:[%s2498_s10 + $0x20] sm:$0xff] %v1577_v38  ;;  %1608 = vst [vmem:[%s2498_s10 + $0x28] sm:$0x7f] %v1578_v55  ;;  %v1559_v5 = vmul.f32 %v3460_v21, %v2029_v41  ;;  %v1560_v20 = vmul.f32 %v3460_v21, %v2030_v47  ;;  %v1561_v0 = vmul.f32 %v3460_v21, %v2031_v60 }
  0xe6   : > { %v2032_v42 = vld [vmem:[%s2375_s21 + $0xa9] sm:$0x7f]  ;;  %1609 = vst [vmem:[%s2498_s10 + $0x30] sm:$0xff] %v1579_v43  ;;  %v1524_v57 = vld [vmem:[%s2498_s10 + $0x78] sm:$0x7f]  ;;  %1611 = vst [vmem:[%s2498_s10 + $0x40] sm:$0xff] %v1581_v13  ;;  %v1586_v2 = vadd.f32 %v1556_v33, %v1522_v15  ;;  %v1587_v7 = vadd.f32 %v1557_v16, %v3566_v22  ;;  %v1563_v27 = vmul.f32 %v3460_v21, %v2033_v39 }
  0xe7   : > { %v1526_v40 = vld [vmem:[%s2498_s10 + $0x88] sm:$0x7f]  ;;  %v2034_v35 = vld [vmem:[%s2375_s21 + $0xb9] sm:$0x7f]  ;;  %1610 = vst [vmem:[%s2498_s10 + $0x38] sm:$0x7f] %v1580_v48  ;;  %v1562_v63 = vmul.f32 %v3460_v21, %v2032_v42  ;;  %v1588_v46 = vadd.f32 %v1558_v56, %v1524_v57  ;;  %v1589_v51 = vadd.f32 %v1559_v5, %v3574_v34  ;;  %v1591_v6 = vadd.f32 %v1561_v0, %v3594_v54 }
  0xe8   : > { %1612 = vst [vmem:[%s2498_s10 + $0x48] sm:$0x7f] %v1582_v37  ;;  %1613 = vst [vmem:[%s2498_s10 + $0x50] sm:$0xff] %v1583_v11  ;;  %v1528_v25 = vld [vmem:[%s2498_s10 + $0x98] sm:$0x7f]  ;;  %v2035_v36 = vld [vmem:[%s2375_s21 + $0xc1] sm:$0xff]  ;;  %v1590_v50 = vadd.f32 %v1560_v20, %v1526_v40  ;;  %v1564_v31 = vmul.f32 %v3460_v21, %v2034_v35  ;;  %v1593_v52 = vadd.f32 %v1563_v27, %v3601_v3 }
  0xe9   : > { %v2036_v45 = vld [vmem:[%s2375_s21 + $0xc9] sm:$0x7f]  ;;  %1614 = vst [vmem:[%s2498_s10 + $0x58] sm:$0x7f] %v1584_v1  ;;  %v2037_v44 = vld [vmem:[%s2375_s21 + $0xd1] sm:$0xff]  ;;  %v2039_v4 = vld [vmem:[%s2375_s21 + $0xe1] sm:$0xff]  ;;  %v1592_v22 = vadd.f32 %v1562_v63, %v1528_v25  ;;  %v1565_v34 = vmul.f32 %v3460_v21, %v2035_v36 }
  0xea   : > { %v2038_v32 = vld [vmem:[%s2375_s21 + $0xd9] sm:$0x7f]  ;;  %v1530_v58 = vld [vmem:[%s2498_s10 + $0xa8] sm:$0x7f]  ;;  %1615 = vst [vmem:[%s2498_s10 + $0x60] sm:$0xff] %v1585_v59  ;;  %1617 = vst [vmem:[%s2498_s10 + $0x70] sm:$0xff] %v1587_v7  ;;  %v1566_v54 = vmul.f32 %v3460_v21, %v2036_v45  ;;  %v1567_v61 = vmul.f32 %v3460_v21, %v2037_v44  ;;  %v1569_v12 = vmul.f32 %v3460_v21, %v2039_v4 }
  0xeb   : > { %v2040_v49 = vld [vmem:[%s2375_s21 + $0xe9] sm:$0x7f]  ;;  %1616 = vst [vmem:[%s2498_s10 + $0x68] sm:$0x7f] %v1586_v2  ;;  %v1532_v23 = vld [vmem:[%s2498_s10 + $0xb8] sm:$0x7f]  ;;  %v1568_v14 = vmul.f32 %v3460_v21, %v2038_v32  ;;  %v1594_v53 = vadd.f32 %v1564_v31, %v1530_v58  ;;  %v1595_v18 = vadd.f32 %v1565_v34, %v3603_v24  ;;  %v1571_v24 = vmul.f32 %v3460_v21, %v3352_v28 }
  0xec   : > { %v1534_v19 = vld [vmem:[%s2498_s10 + $0xc8] sm:$0x7f]  ;;  %1618 = vst [vmem:[%s2498_s10 + $0x78] sm:$0x7f] %v1588_v46  ;;  %1619 = vst [vmem:[%s2498_s10 + $0x80] sm:$0xff] %v1589_v51  ;;  %v1570_v10 = vmul.f32 %v3460_v21, %v2040_v49  ;;  %v1596_v38 = vadd.f32 %v1566_v54, %v1532_v23  ;;  %v1597_v55 = vadd.f32 %v1567_v61, %v3612_v62 }
  0xed   : > { %1620 = vst [vmem:[%s2498_s10 + $0x88] sm:$0x7f] %v1590_v50  ;;  %1621 = vst [vmem:[%s2498_s10 + $0x90] sm:$0xff] %v1591_v6  ;;  %v1536_v26 = vld [vmem:[%s2498_s10 + $0xd8] sm:$0x7f]  ;;  %v1598_v43 = vadd.f32 %v1568_v14, %v1534_v19  ;;  %v1599_v30 = vadd.f32 %v1569_v12, %v3631_v29  ;;  %v1601_v28 = vadd.f32 %v1571_v24, %v3637_v8 }
  0xee   : > { %v2042_v9 = vld [vmem:[%s2375_s21 + $0xf9] sm:$0x7f]  ;;  %1622 = vst [vmem:[%s2498_s10 + $0x98] sm:$0x7f] %v1592_v22  ;;  %v1538_v41 = vld [vmem:[%s2498_s10 + $0xe8] sm:$0x7f]  ;;  %v1600_v3 = vadd.f32 %v1570_v10, %v1536_v26 }
  0xef   : > { %1623 = vst [vmem:[%s2498_s10 + $0xa0] sm:$0xff] %v1593_v52  ;;  %1624 = vst [vmem:[%s2498_s10 + $0xa8] sm:$0x7f] %v1594_v53  ;;  %v1572_v47 = vmul.f32 %v3460_v21, %v2042_v9  ;;  %s2153_s21 = scalar_lea.vmem %s2152_s19, 8192 }
  0xf0   : > { %1625 = vst [vmem:[%s2498_s10 + $0xb0] sm:$0xff] %v1595_v18  ;;  %1626 = vst [vmem:[%s2498_s10 + $0xb8] sm:$0x7f] %v1596_v38  ;;  %p2155_p13 = scmp.lt.s32.totalorder %s2153_s21, %s2147_s7 }
  0xf1   : > { %1627 = vst [vmem:[%s2498_s10 + $0xc0] sm:$0xff] %v1597_v55  ;;  %1628 = vst [vmem:[%s2498_s10 + $0xc8] sm:$0x7f] %v1598_v43  ;;  %v1602_v62 = vadd.f32 %v1572_v47, %v1538_v41 }
  0xf2   : > { %1629 = vst [vmem:[%s2498_s10 + $0xd0] sm:$0xff] %v1599_v30  ;;  %1630 = vst [vmem:[%s2498_s10 + $0xd8] sm:$0x7f] %v1600_v3  ;;  %p2156_p2 = por %p2155_p13, %p2154_p6 }
  0xf3   : > { %1631 = vst [vmem:[%s2498_s10 + $0xe0] sm:$0xff] %v1601_v28  ;;  %1632 = vst [vmem:[%s2498_s10 + $0xe8] sm:$0x7f] %v1602_v62 }
  0xf4   : > { %p2157_p5 = pnand %p2156_p2, %p2150_p0 }
  0xf6   : > { %2160 = shalt.err (!%p2157_p5)
}
  0xf7   : > { %s2161_s6 = scalar_lea.hbm %s3744_s4, 4096  ;;  %s2165_s9 = scalar_lea.hbm %s3802_s3, 8192 }
  0xf8   : > { %p2162_p4 = scmp.ne.s32.totalorder %s3744_s4, %s2161_s6  ;;  %p2166_p12 = scmp.lt.u32.totalorder %s3744_s4, %s3802_s3 }
  0xf9   : > { %p2167_p1 = scmp.lt.u32.totalorder %s2165_s9, %s2161_s6  ;;  %p2169_p8 = scmp.lt.u32.totalorder %s2161_s6, %s3744_s4 }
  0xfa   : > { %p2163_p7 = pnand %p2162_p4, %p3825_p9 }
  0xfb   : > { %p2168_p3 = por %p2167_p1, %p2166_p12 }
  0xfc   : > { %p2164_p10 = pneg %p2163_p7 }
  0xfd   : > { %p2170_p11 = por %p2169_p8, %p2168_p3 }
  0xff   : > { %p2171_p0 = pnand %p2170_p11, %p2164_p10 }
 0x101   : > { %2174 = shalt.err (!%p2171_p0)
}
 0x102   : > { %s2235_s23 = smov 128   ;;  %s2236_s28 = smov 8  }
 0x103   : > { %2053 = dma.vmem_to_hbm [thread:$0]  (%p3825_p9), %s3746_s29, 4096, %s3744_s4, %s1634_s5, %s2235_s23, %s2235_s23, %s2236_s28  }
 0x104 PF: > { %s1663_s15 = sand.u32 1, %s2209_s12   ;;  %p3826_p6 = scmp.ne.s32.totalorder %s3812_s27, 0 }
 0x105   : > { %p3827_p13 = scmp.ge.s32.totalorder %s2229_s17, 2  ;;  %s1664_s30 = scalar_lea.sflag [#allocation4], %s1663_s15 }
 0x107   : > { %p2060_p2 = pnand %p3827_p13, %p3826_p6 }
 0x109   : > { %2204 = dma.done.wait (!%p2060_p2), %s1664_s30, 4096  }
 0x10a   : > { %2206 = vsyncadd (!%p2060_p2), %s1664_s30, 4294963200  ;;  %s19_s17 = sadd.s32 1, %s2229_s17   ;;  %s3828_s12 = smov %s2213_s13 }
 0x10b   : > { %p16_p5 = scmp.ge.s32.totalorder %s19_s17, 4   ;;  %s3829_s13 = smov %s2217_s14 }
 0x10c   : > { %s3830_s14 = smov %s2313_s26  ;;  %s3831_s15 = smov %s2225_s16 }
 0x10d   : > { %s3832_s16 = smov %s3834_s20  ;;  %18 = sbr.rel (!%p16_p5) target bundleno = 6 (0x6), region = 85 }
 0x114   :  { %1669 = vsyncpa [#allocation3], 1 }
 0x115   :  { %1671 = vsyncpa [#allocation3 + $0x1], 1 }
 0x116   :  { %1672 = vsyncpa [#allocation4], 1 }
 0x117   :  { %1674 = vsyncpa [#allocation4 + $0x1], 1 }

</bundles_post_ra>
